<compile_context>
chip_gen: v7x
topology: tpu7x:2x2x1
jax: 0.10.0
libtpu: 0.0.40
codegen_flags: <defaults>
</compile_context>

<pallas_src>
import functools

import jax
import jax.numpy as jnp
from jax.experimental import pallas as pl
from jax.experimental.pallas import tpu as pltpu


# ----------------------------------------------------------------------------
# small helpers
# ----------------------------------------------------------------------------
def _round_up(n, m):
    return ((n + m - 1) // m) * m


def _pad_axis_to_multiple(a, axis, m):
    size = a.shape[axis]
    target = _round_up(size, m)
    if target == size:
        return a
    pads = [(0, 0)] * a.ndim
    pads[axis] = (0, target - size)
    return jnp.pad(a, pads)


_VMEM_LIMIT = 32 * 1024 * 1024  # explicit scoped-VMEM budget (v5e default is 16 MiB)
_ROW = 16                       # row-tile granularity (bf16 sublane-packing friendly)


def _pick_row_tile(m, cap):
    """Pick the matmul row tile.

    Goals: (a) large (HBM roofline: 512-1024 >> 256), (b) >= 2 grid blocks
    whenever M allows so both v7x TensorCores get work, (c) prefer an exact
    divisor of the 16-aligned M so the pad copy / wasted rows vanish.
    """
    m_al = _round_up(max(m, 1), _ROW)
    tm = min(cap, _round_up(-(-m_al // 2), _ROW), m_al)
    c = tm
    while c >= max(_ROW, (3 * tm) // 4):
        if m_al % c == 0:
            return c
        c -= _ROW
    return tm


# ----------------------------------------------------------------------------
# Pallas kernel 1: fused  out = relu?(x @ w + b)   (bf16 MXU, f32 accumulate)
# ----------------------------------------------------------------------------
def _matmul_bias_act_kernel(x_ref, w_ref, b_ref, o_ref, *, apply_relu):
    acc = jnp.dot(x_ref[...], w_ref[...], preferred_element_type=jnp.float32)
    acc = acc + b_ref[...]
    if apply_relu:
        acc = jnp.maximum(acc, 0.0)
    o_ref[...] = acc.astype(o_ref.dtype)


def pallas_matmul_bias_relu(x, w, b, *, apply_relu, out_dtype=jnp.bfloat16,
                            row_cap=1024):
    """x: (M, K) bf16, w: (K, N) bf16, b: (1, N) f32 -> (M, N) out_dtype."""
    M, K = x.shape
    N = w.shape[1]
    tm = _pick_row_tile(M, row_cap)
    m_pad = _round_up(M, tm)
    if m_pad != M:
        # Padded rows compute relu(0 @ W + b) = relu(b) != 0; they are sliced
        # off below and must never be fed forward un-sliced.
        x = jnp.pad(x, ((0, m_pad - M), (0, 0)))

    kernel = functools.partial(_matmul_bias_act_kernel, apply_relu=apply_relu)
    out = pl.pallas_call(
        kernel,
        out_shape=jax.ShapeDtypeStruct((m_pad, N), out_dtype),
        grid=(m_pad // tm,),
        in_specs=[
            pl.BlockSpec((tm, K), lambda i: (i, 0)),
            pl.BlockSpec((K, N), lambda i: (0, 0)),
            pl.BlockSpec((1, N), lambda i: (0, 0)),
        ],
        out_specs=pl.BlockSpec((tm, N), lambda i: (i, 0)),
        compiler_params=pltpu.CompilerParams(
            dimension_semantics=("parallel",),
            vmem_limit_bytes=_VMEM_LIMIT,
        ),
    )(x, w, b)
    return out[:M]


# ----------------------------------------------------------------------------
# Pallas kernel 2: fused MLP head  out = relu(x @ w1 + b1) @ w2 + b2
# (hidden activation stays on-chip; w2/b2 are pre-padded to 128 output lanes)
# ----------------------------------------------------------------------------
def _mlp_kernel(x_ref, w1_ref, b1_ref, w2_ref, b2_ref, o_ref):
    h = jnp.dot(x_ref[...], w1_ref[...], preferred_element_type=jnp.float32)
    h = jnp.maximum(h + b1_ref[...], 0.0)
    o = jnp.dot(h.astype(w2_ref.dtype), w2_ref[...],
                preferred_element_type=jnp.float32)
    o_ref[...] = (o + b2_ref[...]).astype(o_ref.dtype)


def pallas_mlp(x, w1, b1, w2, b2):
    """x: (M, K) bf16, w1: (K, H) bf16, w2: (H, 128) bf16 -> (M, 128) f32."""
    M, K = x.shape
    H = w1.shape[1]
    N = w2.shape[1]
    # Keep the MLP row tile <= 256: the f32 hidden activation (tm, H) lives
    # between the two dots, so bigger tiles just spill (review item).
    tm = _pick_row_tile(M, 256)
    m_pad = _round_up(M, tm)
    if m_pad != M:
        x = jnp.pad(x, ((0, m_pad - M), (0, 0)))

    out = pl.pallas_call(
        _mlp_kernel,
        out_shape=jax.ShapeDtypeStruct((m_pad, N), jnp.float32),
        grid=(m_pad // tm,),
        in_specs=[
            pl.BlockSpec((tm, K), lambda i: (i, 0)),
            pl.BlockSpec((K, H), lambda i: (0, 0)),
            pl.BlockSpec((1, H), lambda i: (0, 0)),
            pl.BlockSpec((H, N), lambda i: (0, 0)),
            pl.BlockSpec((1, N), lambda i: (0, 0)),
        ],
        out_specs=pl.BlockSpec((tm, N), lambda i: (i, 0)),
        compiler_params=pltpu.CompilerParams(
            dimension_semantics=("parallel",),
            vmem_limit_bytes=_VMEM_LIMIT,
        ),
    )(x, w1, b1, w2, b2)
    return out[:M]


# ----------------------------------------------------------------------------
# Conv2d (padding=0) via transpose-free im2col + Pallas matmul (NHWC in/out)
# All activations/patches are bf16; the kernel accumulates in f32.
# ----------------------------------------------------------------------------
def conv2d_relu_nhwc(x_nhwc, w_mat, b, kh, kw, stride):
    """x: (B, H, W, C) bf16, w_mat: (pad128(kh*kw*C), OC) bf16 -> (B, OH, OW, OC) bf16."""
    B, H, W, C = x_nhwc.shape
    oh = (H - kh) // stride + 1
    ow = (W - kw) // stride + 1
    cols = []
    for i in range(kh):
        for j in range(kw):
            cols.append(
                x_nhwc[:, i: i + stride * (oh - 1) + 1: stride,
                          j: j + stride * (ow - 1) + 1: stride, :]
            )                                              # (B, OH, OW, C)
    patches = jnp.concatenate(cols, axis=-1)               # (B, OH, OW, KH*KW*C), no transpose
    patches = patches.reshape(B * oh * ow, kh * kw * C)    # already bf16
    patches = _pad_axis_to_multiple(patches, 1, 128)       # lane-align K (matches w_mat rows)
    out = pallas_matmul_bias_relu(patches, w_mat, b, apply_relu=True,
                                  out_dtype=jnp.bfloat16)
    return out.reshape(B, oh, ow, -1)


# ----------------------------------------------------------------------------
# DQN parameters: raw PyTorch-layout init + one-time kernel-friendly prep
# ----------------------------------------------------------------------------
def init_dqn_params(key, stack, hidden, action_space):
    ks = jax.random.split(key, 10)
    s = 0.05
    return {
        "c1_w": jax.random.normal(ks[0], (32, stack, 8, 8), jnp.float32) * s,
        "c1_b": jax.random.normal(ks[1], (32,), jnp.float32) * s,
        "c2_w": jax.random.normal(ks[2], (64, 32, 4, 4), jnp.float32) * s,
        "c2_b": jax.random.normal(ks[3], (64,), jnp.float32) * s,
        "c3_w": jax.random.normal(ks[4], (64, 64, 3, 3), jnp.float32) * s,
        "c3_b": jax.random.normal(ks[5], (64,), jnp.float32) * s,
        # stored as (in, out): out = x_flat_pt @ W + b  (== PyTorch x @ W.T + b)
        "fc1_w": jax.random.normal(ks[6], (3136, hidden), jnp.float32) * s,
        "fc1_b": jax.random.normal(ks[7], (hidden,), jnp.float32) * s,
        "fc2_w": jax.random.normal(ks[8], (hidden, action_space), jnp.float32) * s,
        "fc2_b": jax.random.normal(ks[9], (action_space,), jnp.float32) * s,
    }


def prepare_params(params, action_space):
    """One-time layout/dtype prep so the hot path has zero transposes."""
    def conv_mat(w_oihw):
        oc, ic, kh, kw = w_oihw.shape
        m = w_oihw.transpose(2, 3, 1, 0).reshape(kh * kw * ic, oc)   # rows in (kh, kw, c) order
        return _pad_axis_to_multiple(m, 0, 128).astype(jnp.bfloat16)

    # Fold PyTorch's NCHW (c, h, w) flatten into a fc1 row permutation so the
    # kernel can consume the NHWC-flat conv3 output directly.
    c, hw = 64, 49                                    # conv3 output: 64 ch, 7x7
    # Guard the hard-coded constants (84x84 Atari input => 7x7x64 conv3 out).
    assert params["fc1_w"].shape[0] == c * hw, (
        "fc1 permutation assumes a 7x7x64 conv3 output (84x84 input); got "
        f"fc1 in-features = {params['fc1_w'].shape[0]}")
    assert params["c3_w"].shape[0] == c
    p = jnp.arange(c * hw)
    perm = (p % c) * hw + (p // c)
    fc1 = params["fc1_w"][perm]                       # rows now in (h, w, c) order
    fc1 = _pad_axis_to_multiple(fc1, 0, 128).astype(jnp.bfloat16)    # K: 3136 -> 3200

    hidden = params["fc2_w"].shape[0]
    w2p = jnp.zeros((hidden, 128), jnp.float32).at[:, :action_space].set(params["fc2_w"])
    b2p = jnp.zeros((1, 128), jnp.float32).at[:, :action_space].set(params["fc2_b"])

    return {
        "c1_w": conv_mat(params["c1_w"]), "c1_b": params["c1_b"].reshape(1, -1),
        "c2_w": conv_mat(params["c2_w"]), "c2_b": params["c2_b"].reshape(1, -1),
        "c3_w": conv_mat(params["c3_w"]), "c3_b": params["c3_b"].reshape(1, -1),
        "fc1_w": fc1, "fc1_b": params["fc1_b"].reshape(1, -1),
        "fc2_w": w2p.astype(jnp.bfloat16), "fc2_b": b2p,
    }


# ----------------------------------------------------------------------------
# Forward pass (matches DQN.forward semantics)
# ----------------------------------------------------------------------------
def dqn_forward(prep, x_nchw, n_actions):
    """x: (B, stack, 84, 84) f32 -> (B, n_actions) f32."""
    B = x_nchw.shape[0]
    # One-time NCHW -> NHWC transpose and one-time f32 -> bf16 cast; every
    # later stage (patches, conv outputs) stays bf16.
    x = jnp.transpose(x_nchw, (0, 2, 3, 1)).astype(jnp.bfloat16)
    x = conv2d_relu_nhwc(x, prep["c1_w"], prep["c1_b"], 8, 8, 4)  # (B, 20, 20, 32)
    x = conv2d_relu_nhwc(x, prep["c2_w"], prep["c2_b"], 4, 4, 2)  # (B,  9,  9, 64)
    x = conv2d_relu_nhwc(x, prep["c3_w"], prep["c3_b"], 3, 3, 1)  # (B,  7,  7, 64)
    assert x.shape[1:] == (7, 7, 64), x.shape          # matches the fc1 row permutation
    x = x.reshape(B, -1)                               # NHWC-flat bf16; PyTorch order folded into fc1_w
    x = _pad_axis_to_multiple(x, 1, 128)               # 3136 -> 3200 (matches fc1_w rows)
    out = pallas_mlp(x, prep["fc1_w"], prep["fc1_b"], prep["fc2_w"], prep["fc2_b"])
    return out[:, :n_actions]


# ----------------------------------------------------------------------------
# Pure-JAX reference (raw PyTorch-layout params, f32 HIGHEST) for sanity only
# ----------------------------------------------------------------------------
def dqn_reference(params, x):
    hp = jax.lax.Precision.HIGHEST
    dn = ("NCHW", "OIHW", "NCHW")

    def conv(x, w, b, s):
        y = jax.lax.conv_general_dilated(
            x, w, (s, s), "VALID", dimension_numbers=dn, precision=hp)
        return jnp.maximum(y + b[None, :, None, None], 0.0)

    x = conv(x, params["c1_w"], params["c1_b"], 4)
    x = conv(x, params["c2_w"], params["c2_b"], 2)
    x = conv(x, params["c3_w"], params["c3_b"], 1)
    x = x.reshape(x.shape[0], -1)
    x = jnp.maximum(jnp.dot(x, params["fc1_w"], precision=hp) + params["fc1_b"], 0.0)
    return jnp.dot(x, params["fc2_w"], precision=hp) + params["fc2_b"]


# ----------------------------------------------------------------------------
if __name__ == "__main__":
    # conv_output_size = 3136 (= 64 * 7 * 7) implies an 84x84 input (Atari DQN).
    B, STACK, H, W = 2, 4, 84, 84
    HIDDEN, ACTIONS = 32, 6

    key = jax.random.PRNGKey(0)
    k_x, k_p = jax.random.split(key)
    x = jax.random.normal(k_x, (B, STACK, H, W), jnp.float32)
    params = init_dqn_params(k_p, STACK, HIDDEN, ACTIONS)
    prep = prepare_params(params, ACTIONS)

    fwd = jax.jit(dqn_forward, static_argnums=(2,))
    out = jax.block_until_ready(fwd(prep, x, ACTIONS))
    assert out.shape == (B, ACTIONS), out.shape

    ref = jax.block_until_ready(dqn_reference(params, x))
    max_err = float(jnp.max(jnp.abs(out - ref)))
    # bf16 MXU operands with f32 accumulation -> bf16-class error vs f32 HIGHEST ref.
    assert jnp.allclose(out, ref, rtol=2e-2, atol=2e-2), max_err

    print("KERNEL_OK")
</pallas_src>

<mosaic_0001>
module attributes {stable_mosaic.version = 11 : i64} {
  func.func @_matmul_bias_act_kernel(%arg0: i32, %arg1: memref<400x256xbf16, #tpu.memory_space<vmem>>, %arg2: memref<256x32xbf16, #tpu.memory_space<vmem>>, %arg3: memref<1x32xf32, #tpu.memory_space<vmem>>, %arg4: memref<400x32xbf16, #tpu.memory_space<vmem>>) attributes {dimension_semantics = [#tpu.dimension_semantics<parallel>], iteration_bounds = array<i64: 2>, scalar_prefetch = 0 : i64, scratch_operands = 0 : i64, tpu.core_type = #tpu.core_type<tc>, window_params = [{transform_indices = @transform_0, window_bounds = array<i64: 400, 256>}, {pipeline_mode = #tpu.pipeline_mode<synchronous>, transform_indices = @transform_1, window_bounds = array<i64: 256, 32>}, {pipeline_mode = #tpu.pipeline_mode<synchronous>, transform_indices = @transform_2, window_bounds = array<i64: 1, 32>}, {transform_indices = @transform_3, window_bounds = array<i64: 400, 32>}]} {
    %c0 = arith.constant 0 : index
    %c0_0 = arith.constant 0 : index
    %0 = vector.load %arg1[%c0, %c0_0] : memref<400x256xbf16, #tpu.memory_space<vmem>>, vector<400x256xbf16>
    %c0_1 = arith.constant 0 : index
    %c0_2 = arith.constant 0 : index
    %1 = vector.load %arg2[%c0_1, %c0_2] : memref<256x32xbf16, #tpu.memory_space<vmem>>, vector<256x32xbf16>
    %cst = arith.constant dense<0.000000e+00> : vector<400x32xf32>
    %2 = tpu.matmul %0, %1, %cst {dimension_numbers = #tpu.dot_dimension_numbers<[1], [0], [0], [1], [0, 0, 1, 1], [], []>} : vector<400x256xbf16>, vector<256x32xbf16>, vector<400x32xf32> -> vector<400x32xf32>
    %c0_3 = arith.constant 0 : index
    %c0_4 = arith.constant 0 : index
    %3 = vector.load %arg3[%c0_3, %c0_4] : memref<1x32xf32, #tpu.memory_space<vmem>>, vector<1x32xf32>
    %4 = vector.broadcast %3 : vector<1x32xf32> to vector<400x32xf32>
    %5 = arith.addf %2, %4 : vector<400x32xf32>
    %cst_5 = arith.constant 0.000000e+00 : f32
    %6 = vector.broadcast %cst_5 : f32 to vector<400x32xf32>
    %7 = arith.maximumf %5, %6 : vector<400x32xf32>
    %8 = arith.truncf %7 : vector<400x32xf32> to vector<400x32xbf16>
    %c0_6 = arith.constant 0 : index
    %c0_7 = arith.constant 0 : index
    %9 = vector.load %arg4[%c0_6, %c0_7] : memref<400x32xbf16, #tpu.memory_space<vmem>>, vector<400x32xbf16>
    tpu.vector_store %arg4[%c0_6, %c0_7], %8 {strides = array<i32>} : memref<400x32xbf16, #tpu.memory_space<vmem>>, vector<400x32xbf16>,
    return
  }
  func.func @transform_0(%arg0: i32) -> (i32, i32) {
    %c0_i32 = arith.constant 0 : i32
    %c0_i32_0 = arith.constant 0 : i32
    return %arg0, %c0_i32 : i32, i32
  }
  func.func @transform_1(%arg0: i32) -> (i32, i32) {
    %c0_i32 = arith.constant 0 : i32
    %c0_i32_0 = arith.constant 0 : i32
    %c0_i32_1 = arith.constant 0 : i32
    return %c0_i32, %c0_i32_0 : i32, i32
  }
  func.func @transform_2(%arg0: i32) -> (i32, i32) {
    %c0_i32 = arith.constant 0 : i32
    %c0_i32_0 = arith.constant 0 : i32
    %c0_i32_1 = arith.constant 0 : i32
    return %c0_i32, %c0_i32_0 : i32, i32
  }
  func.func @transform_3(%arg0: i32) -> (i32, i32) {
    %c0_i32 = arith.constant 0 : i32
    %c0_i32_0 = arith.constant 0 : i32
    return %arg0, %c0_i32 : i32, i32
  }
}

module attributes {stable_mosaic.version = 11 : i64} {
  func.func @_matmul_bias_act_kernel(%arg0: i32, %arg1: memref<96x512xbf16, #tpu.memory_space<vmem>>, %arg2: memref<512x64xbf16, #tpu.memory_space<vmem>>, %arg3: memref<1x64xf32, #tpu.memory_space<vmem>>, %arg4: memref<96x64xbf16, #tpu.memory_space<vmem>>) attributes {dimension_semantics = [#tpu.dimension_semantics<parallel>], iteration_bounds = array<i64: 2>, scalar_prefetch = 0 : i64, scratch_operands = 0 : i64, tpu.core_type = #tpu.core_type<tc>, window_params = [{transform_indices = @transform_0, window_bounds = array<i64: 96, 512>}, {pipeline_mode = #tpu.pipeline_mode<synchronous>, transform_indices = @transform_1, window_bounds = array<i64: 512, 64>}, {pipeline_mode = #tpu.pipeline_mode<synchronous>, transform_indices = @transform_2, window_bounds = array<i64: 1, 64>}, {transform_indices = @transform_3, window_bounds = array<i64: 96, 64>}]} {
    %c0 = arith.constant 0 : index
    %c0_0 = arith.constant 0 : index
    %0 = vector.load %arg1[%c0, %c0_0] : memref<96x512xbf16, #tpu.memory_space<vmem>>, vector<96x512xbf16>
    %c0_1 = arith.constant 0 : index
    %c0_2 = arith.constant 0 : index
    %1 = vector.load %arg2[%c0_1, %c0_2] : memref<512x64xbf16, #tpu.memory_space<vmem>>, vector<512x64xbf16>
    %cst = arith.constant dense<0.000000e+00> : vector<96x64xf32>
    %2 = tpu.matmul %0, %1, %cst {dimension_numbers = #tpu.dot_dimension_numbers<[1], [0], [0], [1], [0, 0, 1, 1], [], []>} : vector<96x512xbf16>, vector<512x64xbf16>, vector<96x64xf32> -> vector<96x64xf32>
    %c0_3 = arith.constant 0 : index
    %c0_4 = arith.constant 0 : index
    %3 = vector.load %arg3[%c0_3, %c0_4] : memref<1x64xf32, #tpu.memory_space<vmem>>, vector<1x64xf32>
    %4 = vector.broadcast %3 : vector<1x64xf32> to vector<96x64xf32>
    %5 = arith.addf %2, %4 : vector<96x64xf32>
    %cst_5 = arith.constant 0.000000e+00 : f32
    %6 = vector.broadcast %cst_5 : f32 to vector<96x64xf32>
    %7 = arith.maximumf %5, %6 : vector<96x64xf32>
    %8 = arith.truncf %7 : vector<96x64xf32> to vector<96x64xbf16>
    %c0_6 = arith.constant 0 : index
    %c0_7 = arith.constant 0 : index
    %9 = vector.load %arg4[%c0_6, %c0_7] : memref<96x64xbf16, #tpu.memory_space<vmem>>, vector<96x64xbf16>
    tpu.vector_store %arg4[%c0_6, %c0_7], %8 {strides = array<i32>} : memref<96x64xbf16, #tpu.memory_space<vmem>>, vector<96x64xbf16>,
    return
  }
  func.func @transform_0(%arg0: i32) -> (i32, i32) {
    %c0_i32 = arith.constant 0 : i32
    %c0_i32_0 = arith.constant 0 : i32
    return %arg0, %c0_i32 : i32, i32
  }
  func.func @transform_1(%arg0: i32) -> (i32, i32) {
    %c0_i32 = arith.constant 0 : i32
    %c0_i32_0 = arith.constant 0 : i32
    %c0_i32_1 = arith.constant 0 : i32
    return %c0_i32, %c0_i32_0 : i32, i32
  }
  func.func @transform_2(%arg0: i32) -> (i32, i32) {
    %c0_i32 = arith.constant 0 : i32
    %c0_i32_0 = arith.constant 0 : i32
    %c0_i32_1 = arith.constant 0 : i32
    return %c0_i32, %c0_i32_0 : i32, i32
  }
  func.func @transform_3(%arg0: i32) -> (i32, i32) {
    %c0_i32 = arith.constant 0 : i32
    %c0_i32_0 = arith.constant 0 : i32
    return %arg0, %c0_i32 : i32, i32
  }
}

module attributes {stable_mosaic.version = 11 : i64} {
  func.func @_matmul_bias_act_kernel(%arg0: i32, %arg1: memref<64x640xbf16, #tpu.memory_space<vmem>>, %arg2: memref<640x64xbf16, #tpu.memory_space<vmem>>, %arg3: memref<1x64xf32, #tpu.memory_space<vmem>>, %arg4: memref<64x64xbf16, #tpu.memory_space<vmem>>) attributes {dimension_semantics = [#tpu.dimension_semantics<parallel>], iteration_bounds = array<i64: 2>, scalar_prefetch = 0 : i64, scratch_operands = 0 : i64, tpu.core_type = #tpu.core_type<tc>, window_params = [{transform_indices = @transform_0, window_bounds = array<i64: 64, 640>}, {pipeline_mode = #tpu.pipeline_mode<synchronous>, transform_indices = @transform_1, window_bounds = array<i64: 640, 64>}, {pipeline_mode = #tpu.pipeline_mode<synchronous>, transform_indices = @transform_2, window_bounds = array<i64: 1, 64>}, {transform_indices = @transform_3, window_bounds = array<i64: 64, 64>}]} {
    %c0 = arith.constant 0 : index
    %c0_0 = arith.constant 0 : index
    %0 = vector.load %arg1[%c0, %c0_0] : memref<64x640xbf16, #tpu.memory_space<vmem>>, vector<64x640xbf16>
    %c0_1 = arith.constant 0 : index
    %c0_2 = arith.constant 0 : index
    %1 = vector.load %arg2[%c0_1, %c0_2] : memref<640x64xbf16, #tpu.memory_space<vmem>>, vector<640x64xbf16>
    %cst = arith.constant dense<0.000000e+00> : vector<64x64xf32>
    %2 = tpu.matmul %0, %1, %cst {dimension_numbers = #tpu.dot_dimension_numbers<[1], [0], [0], [1], [0, 0, 1, 1], [], []>} : vector<64x640xbf16>, vector<640x64xbf16>, vector<64x64xf32> -> vector<64x64xf32>
    %c0_3 = arith.constant 0 : index
    %c0_4 = arith.constant 0 : index
    %3 = vector.load %arg3[%c0_3, %c0_4] : memref<1x64xf32, #tpu.memory_space<vmem>>, vector<1x64xf32>
    %4 = vector.broadcast %3 : vector<1x64xf32> to vector<64x64xf32>
    %5 = arith.addf %2, %4 : vector<64x64xf32>
    %cst_5 = arith.constant 0.000000e+00 : f32
    %6 = vector.broadcast %cst_5 : f32 to vector<64x64xf32>
    %7 = arith.maximumf %5, %6 : vector<64x64xf32>
    %8 = arith.truncf %7 : vector<64x64xf32> to vector<64x64xbf16>
    %c0_6 = arith.constant 0 : index
    %c0_7 = arith.constant 0 : index
    %9 = vector.load %arg4[%c0_6, %c0_7] : memref<64x64xbf16, #tpu.memory_space<vmem>>, vector<64x64xbf16>
    tpu.vector_store %arg4[%c0_6, %c0_7], %8 {strides = array<i32>} : memref<64x64xbf16, #tpu.memory_space<vmem>>, vector<64x64xbf16>,
    return
  }
  func.func @transform_0(%arg0: i32) -> (i32, i32) {
    %c0_i32 = arith.constant 0 : i32
    %c0_i32_0 = arith.constant 0 : i32
    return %arg0, %c0_i32 : i32, i32
  }
  func.func @transform_1(%arg0: i32) -> (i32, i32) {
    %c0_i32 = arith.constant 0 : i32
    %c0_i32_0 = arith.constant 0 : i32
    %c0_i32_1 = arith.constant 0 : i32
    return %c0_i32, %c0_i32_0 : i32, i32
  }
  func.func @transform_2(%arg0: i32) -> (i32, i32) {
    %c0_i32 = arith.constant 0 : i32
    %c0_i32_0 = arith.constant 0 : i32
    %c0_i32_1 = arith.constant 0 : i32
    return %c0_i32, %c0_i32_0 : i32, i32
  }
  func.func @transform_3(%arg0: i32) -> (i32, i32) {
    %c0_i32 = arith.constant 0 : i32
    %c0_i32_0 = arith.constant 0 : i32
    return %arg0, %c0_i32 : i32, i32
  }
}

module attributes {stable_mosaic.version = 11 : i64} {
  func.func @_mlp_kernel(%arg0: i32, %arg1: memref<16x3200xbf16, #tpu.memory_space<vmem>>, %arg2: memref<3200x32xbf16, #tpu.memory_space<vmem>>, %arg3: memref<1x32xf32, #tpu.memory_space<vmem>>, %arg4: memref<32x128xbf16, #tpu.memory_space<vmem>>, %arg5: memref<1x128xf32, #tpu.memory_space<vmem>>, %arg6: memref<16x128xf32, #tpu.memory_space<vmem>>) attributes {dimension_semantics = [#tpu.dimension_semantics<parallel>], iteration_bounds = array<i64: 1>, scalar_prefetch = 0 : i64, scratch_operands = 0 : i64, tpu.core_type = #tpu.core_type<tc>, window_params = [{transform_indices = @transform_0, window_bounds = array<i64: 16, 3200>}, {pipeline_mode = #tpu.pipeline_mode<synchronous>, transform_indices = @transform_1, window_bounds = array<i64: 3200, 32>}, {pipeline_mode = #tpu.pipeline_mode<synchronous>, transform_indices = @transform_2, window_bounds = array<i64: 1, 32>}, {pipeline_mode = #tpu.pipeline_mode<synchronous>, transform_indices = @transform_3, window_bounds = array<i64: 32, 128>}, {pipeline_mode = #tpu.pipeline_mode<synchronous>, transform_indices = @transform_4, window_bounds = array<i64: 1, 128>}, {transform_indices = @transform_5, window_bounds = array<i64: 16, 128>}]} {
    %c0 = arith.constant 0 : index
    %c0_0 = arith.constant 0 : index
    %0 = vector.load %arg1[%c0, %c0_0] : memref<16x3200xbf16, #tpu.memory_space<vmem>>, vector<16x3200xbf16>
    %c0_1 = arith.constant 0 : index
    %c0_2 = arith.constant 0 : index
    %1 = vector.load %arg2[%c0_1, %c0_2] : memref<3200x32xbf16, #tpu.memory_space<vmem>>, vector<3200x32xbf16>
    %cst = arith.constant dense<0.000000e+00> : vector<16x32xf32>
    %2 = tpu.matmul %0, %1, %cst {dimension_numbers = #tpu.dot_dimension_numbers<[1], [0], [0], [1], [0, 0, 1, 1], [], []>} : vector<16x3200xbf16>, vector<3200x32xbf16>, vector<16x32xf32> -> vector<16x32xf32>
    %c0_3 = arith.constant 0 : index
    %c0_4 = arith.constant 0 : index
    %3 = vector.load %arg3[%c0_3, %c0_4] : memref<1x32xf32, #tpu.memory_space<vmem>>, vector<1x32xf32>
    %4 = vector.broadcast %3 : vector<1x32xf32> to vector<16x32xf32>
    %5 = arith.addf %2, %4 : vector<16x32xf32>
    %cst_5 = arith.constant 0.000000e+00 : f32
    %6 = vector.broadcast %cst_5 : f32 to vector<16x32xf32>
    %7 = arith.maximumf %5, %6 : vector<16x32xf32>
    %8 = arith.truncf %7 : vector<16x32xf32> to vector<16x32xbf16>
    %c0_6 = arith.constant 0 : index
    %c0_7 = arith.constant 0 : index
    %9 = vector.load %arg4[%c0_6, %c0_7] : memref<32x128xbf16, #tpu.memory_space<vmem>>, vector<32x128xbf16>
    %cst_8 = arith.constant dense<0.000000e+00> : vector<16x128xf32>
    %10 = tpu.matmul %8, %9, %cst_8 {dimension_numbers = #tpu.dot_dimension_numbers<[1], [0], [0], [1], [0, 0, 1, 1], [], []>} : vector<16x32xbf16>, vector<32x128xbf16>, vector<16x128xf32> -> vector<16x128xf32>
    %c0_9 = arith.constant 0 : index
    %c0_10 = arith.constant 0 : index
    %11 = vector.load %arg5[%c0_9, %c0_10] : memref<1x128xf32, #tpu.memory_space<vmem>>, vector<1x128xf32>
    %12 = vector.broadcast %11 : vector<1x128xf32> to vector<16x128xf32>
    %13 = arith.addf %10, %12 : vector<16x128xf32>
    %c0_11 = arith.constant 0 : index
    %c0_12 = arith.constant 0 : index
    %14 = vector.load %arg6[%c0_11, %c0_12] : memref<16x128xf32, #tpu.memory_space<vmem>>, vector<16x128xf32>
    tpu.vector_store %arg6[%c0_11, %c0_12], %13 {strides = array<i32>} : memref<16x128xf32, #tpu.memory_space<vmem>>, vector<16x128xf32>,
    return
  }
  func.func @transform_0(%arg0: i32) -> (i32, i32) {
    %c0_i32 = arith.constant 0 : i32
    %c0_i32_0 = arith.constant 0 : i32
    return %arg0, %c0_i32 : i32, i32
  }
  func.func @transform_1(%arg0: i32) -> (i32, i32) {
    %c0_i32 = arith.constant 0 : i32
    %c0_i32_0 = arith.constant 0 : i32
    %c0_i32_1 = arith.constant 0 : i32
    return %c0_i32, %c0_i32_0 : i32, i32
  }
  func.func @transform_2(%arg0: i32) -> (i32, i32) {
    %c0_i32 = arith.constant 0 : i32
    %c0_i32_0 = arith.constant 0 : i32
    %c0_i32_1 = arith.constant 0 : i32
    return %c0_i32, %c0_i32_0 : i32, i32
  }
  func.func @transform_3(%arg0: i32) -> (i32, i32) {
    %c0_i32 = arith.constant 0 : i32
    %c0_i32_0 = arith.constant 0 : i32
    %c0_i32_1 = arith.constant 0 : i32
    return %c0_i32, %c0_i32_0 : i32, i32
  }
  func.func @transform_4(%arg0: i32) -> (i32, i32) {
    %c0_i32 = arith.constant 0 : i32
    %c0_i32_0 = arith.constant 0 : i32
    %c0_i32_1 = arith.constant 0 : i32
    return %c0_i32, %c0_i32_0 : i32, i32
  }
  func.func @transform_5(%arg0: i32) -> (i32, i32) {
    %c0_i32 = arith.constant 0 : i32
    %c0_i32_0 = arith.constant 0 : i32
    return %arg0, %c0_i32 : i32, i32
  }
}

</mosaic_0001>

<bundles_post_ra>
// kernel: dqn_forward.4
= control target key start
LH: loop header
LB: loop body
LE: loop exit
PB: predicated region body
PF: predicated region fallthrough
CT: control target
= control target key end

     0   :  { %s1542_s12 = smov 0   ;;  %s1852_s0 = inlined_call_operand.vmem [shape: bf16[800,256], index: 0, kind: input, shape index: {}]   ;;  %s1853_s1 = inlined_call_operand.vmem [shape: bf16[256,32], index: 1, kind: input, shape index: {}]   ;;  %s1854_s2 = inlined_call_operand.vmem [shape: f32[1,32], index: 2, kind: input, shape index: {}]   ;;  %s1855_s3 = inlined_call_operand.vmem [shape: bf16[800,32], index: 3, kind: output, shape index: {}]  }
   0x1 LB: > { %s1203_s13 = sadd.s32 4294967295, %s1519_s12   ;;  %p1207_p0 = scmp.ge.s32.totalorder %s1519_s12, 1  ;;  %s1519_s12 = sphi %s1542_s12, %s13_s12  }
   0x2   : > { %p139_p1 = scmp.lt.s32.totalorder %s1519_s12, 3 }
   0x4   : > { %p140_p2 = pnand %p1207_p0, %p139_p1 }
   0x5   : > { %v1422_v0 = vld [vmem:[%s1853_s1] sm:$0xff] (!%p140_p2)   ;;  %v1521_v1 = vmov (!%p140_p2), 0   ;;  %s164_s16 = smul.u32 (!%p140_p2), 50, %s1203_s13  ;;  %v1423_v2 = vld [vmem:[%s1853_s1 + $0x8] sm:$0xff] (!%p140_p2)   ;;  %v1424_v3 = vld [vmem:[%s1853_s1 + $0x10] sm:$0xff] (!%p140_p2)   ;;  %vm1096_vm0 = vcmask (!%p140_p2), 257024  }
   0x6   : > { %143 = sbr.rel (%p140_p2) target bundleno = 387 (0x183), region = 32  ;;  %613 = vmatprep.subr.bf16.mxu0 (!%p140_p2), %v1521_v1  ;;  %1381 = vmatprep.subr.bf16.mxu1 (!%p140_p2), %v1521_v1  ;;  %v1425_v4 = vld [vmem:[%s1853_s1 + $0x18] sm:$0xff] (!%p140_p2)   ;;  %v1426_v5 = vld [vmem:[%s1853_s1 + $0x20] sm:$0xff] (!%p140_p2)   ;;  %v1427_v7 = vld [vmem:[%s1853_s1 + $0x28] sm:$0xff] (!%p140_p2)  }
   0x7   : > { %614 = vmatpush1.bf16.msra.mxu0 (!%p140_p2), %v1422_v0  ;;  %1397 = vmatpush1.bf16.msra.mxu1 (!%p140_p2), %v1422_v0  ;;  %p165_p3 = scmp.lt.s32.totalorder (!%p140_p2), %s164_s16, 99  ;;  %v1428_v9 = vld [vmem:[%s1853_s1 + $0x30] sm:$0xff] (!%p140_p2)   ;;  %v1429_v10 = vld [vmem:[%s1853_s1 + $0x38] sm:$0xff] (!%p140_p2)   ;;  %v1430_v11 = vld [vmem:[%s1853_s1 + $0x40] sm:$0xff] (!%p140_p2)  }
   0x8   : > { %615 = vmatprep.subr.bf16.mxu0 (!%p140_p2), %v1521_v1  ;;  %1382 = vmatprep.subr.bf16.mxu1 (!%p140_p2), %v1521_v1  ;;  %v1431_v12 = vld [vmem:[%s1853_s1 + $0x48] sm:$0xff] (!%p140_p2)   ;;  %v1432_v13 = vld [vmem:[%s1853_s1 + $0x50] sm:$0xff] (!%p140_p2)   ;;  %v1433_v14 = vld [vmem:[%s1853_s1 + $0x58] sm:$0xff] (!%p140_p2)  }
   0x9   : > { %v1434_v15 = vld [vmem:[%s1853_s1 + $0x60] sm:$0xff] (!%p140_p2)   ;;  %v1435_v16 = vld [vmem:[%s1853_s1 + $0x68] sm:$0xff] (!%p140_p2)   ;;  %v1436_v17 = vld [vmem:[%s1853_s1 + $0x70] sm:$0xff] (!%p140_p2)  }
   0xa   : > { %v1437_v18 = vld [vmem:[%s1853_s1 + $0x78] sm:$0xff] (!%p140_p2)  }
   0xb   : > { %616 = vmatpush1.bf16.msra.mxu0 (!%p140_p2), %v1423_v2  ;;  %1398 = vmatpush1.bf16.msra.mxu1 (!%p140_p2), %v1423_v2 }
   0xc   : > { %617 = vmatprep.subr.bf16.mxu0 (!%p140_p2), %v1521_v1  ;;  %1383 = vmatprep.subr.bf16.mxu1 (!%p140_p2), %v1521_v1 }
   0xd   : > { %s1857_s16 = smov (!%p165_p3, %s164_s16), 99 }
   0xe   : > { %s1330_s23 = sshll.u32 %s1857_s16, 3  ;;  %s1210_s29 = sshll.u32 %s1857_s16, 2 }
   0xf   : > { %618 = vmatpush1.bf16.msra.mxu0 %v1424_v3  ;;  %1399 = vmatpush1.bf16.msra.mxu1 %v1424_v3  ;;  %s1579_s28 = scalar_lea.vmem %s1852_s0, %s1330_s23  ;;  %v1691_v3 = vld [vmem:[%s1854_s2] ss:$0 sm:$0xff]  ;;  %s1701_s16 = scalar_lea.vmem %s1855_s3, %s1210_s29 }
  0x10   : > { %619 = vmatprep.subr.bf16.mxu0 %v1521_v1  ;;  %1384 = vmatprep.subr.bf16.mxu1 %v1521_v1  ;;  %v1440_v6 = vld [vmem:[%s1579_s28 + $0x4] ss:$8 sps:$4 sm:$0xff]   ;;  %v1443_v8 = vld [vmem:[%s1579_s28 + $0xd4] ss:$8 sps:$4 sm:$0xff]   ;;  %v1438_v19 = vld [vmem:[%s1579_s28] ss:$8 sps:$4 sm:$0xff]  }
  0x11   : > { %645 = vmatprep.mubr.bf16.mxu0 %v1440_v6  ;;  %749 = vmatprep.mubr.bf16.mxu1 %v1443_v8  ;;  %v1441_v20 = vld [vmem:[%s1579_s28 + $0xd0] ss:$8 sps:$4 sm:$0xff]   ;;  %v1444_v21 = vld [vmem:[%s1579_s28 + $0x14] ss:$8 sps:$4 sm:$0xff]   ;;  %v1447_v22 = vld [vmem:[%s1579_s28 + $0xe4] ss:$8 sps:$4 sm:$0xff]  }
  0x12   : > { %v1446_v23 = vld [vmem:[%s1579_s28 + $0x10] ss:$8 sps:$4 sm:$0xff]   ;;  %v1449_v24 = vld [vmem:[%s1579_s28 + $0xe0] ss:$8 sps:$4 sm:$0xff]   ;;  %v1450_v25 = vld [vmem:[%s1579_s28 + $0x24] ss:$8 sps:$4 sm:$0xff]  }
  0x13   : > { %620 = vmatpush1.bf16.msra.mxu0 %v1425_v4  ;;  %1400 = vmatpush1.bf16.msra.mxu1 %v1425_v4  ;;  %v1453_v26 = vld [vmem:[%s1579_s28 + $0xf4] ss:$8 sps:$4 sm:$0xff]   ;;  %v1452_v27 = vld [vmem:[%s1579_s28 + $0x20] ss:$8 sps:$4 sm:$0xff]   ;;  %v1455_v28 = vld [vmem:[%s1579_s28 + $0xf0] ss:$8 sps:$4 sm:$0xff]  }
  0x14   : > { %621 = vmatprep.subr.bf16.mxu0 %v1521_v1  ;;  %1385 = vmatprep.subr.bf16.mxu1 %v1521_v1  ;;  %v1456_v29 = vld [vmem:[%s1579_s28 + $0x34] ss:$8 sps:$4 sm:$0xff]   ;;  %v1459_v30 = vld [vmem:[%s1579_s28 + $0x104] ss:$8 sps:$4 sm:$0xff]   ;;  %v1458_v31 = vld [vmem:[%s1579_s28 + $0x30] ss:$8 sps:$4 sm:$0xff]  }
  0x15   : > { %v1461_v32 = vld [vmem:[%s1579_s28 + $0x100] ss:$8 sps:$4 sm:$0xff]   ;;  %v1462_v33 = vld [vmem:[%s1579_s28 + $0x44] ss:$8 sps:$4 sm:$0xff]   ;;  %v1465_v34 = vld [vmem:[%s1579_s28 + $0x114] ss:$8 sps:$4 sm:$0xff]  }
  0x16   : > { %v1464_v35 = vld [vmem:[%s1579_s28 + $0x40] ss:$8 sps:$4 sm:$0xff]   ;;  %v1467_v36 = vld [vmem:[%s1579_s28 + $0x110] ss:$8 sps:$4 sm:$0xff]   ;;  %v1468_v37 = vld [vmem:[%s1579_s28 + $0x54] ss:$8 sps:$4 sm:$0xff]  }
  0x17   : > { %622 = vmatpush1.bf16.msra.mxu0 %v1426_v5  ;;  %1401 = vmatpush1.bf16.msra.mxu1 %v1426_v5  ;;  %v1471_v38 = vld [vmem:[%s1579_s28 + $0x124] ss:$8 sps:$4 sm:$0xff]   ;;  %v1470_v39 = vld [vmem:[%s1579_s28 + $0x50] ss:$8 sps:$4 sm:$0xff]   ;;  %v1473_v40 = vld [vmem:[%s1579_s28 + $0x120] ss:$8 sps:$4 sm:$0xff]  }
  0x18   : > { %623 = vmatprep.subr.bf16.mxu0 %v1521_v1  ;;  %1386 = vmatprep.subr.bf16.mxu1 %v1521_v1  ;;  %v1474_v41 = vld [vmem:[%s1579_s28 + $0x64] ss:$8 sps:$4 sm:$0xff]   ;;  %v1477_v42 = vld [vmem:[%s1579_s28 + $0x134] ss:$8 sps:$4 sm:$0xff]   ;;  %v1476_v43 = vld [vmem:[%s1579_s28 + $0x60] ss:$8 sps:$4 sm:$0xff]  }
  0x19   : > { %v1479_v44 = vld [vmem:[%s1579_s28 + $0x130] ss:$8 sps:$4 sm:$0xff]   ;;  %v1480_v45 = vld [vmem:[%s1579_s28 + $0x74] ss:$8 sps:$4 sm:$0xff]   ;;  %v1483_v46 = vld [vmem:[%s1579_s28 + $0x144] ss:$8 sps:$4 sm:$0xff]  }
  0x1a   : > { %v1482_v47 = vld [vmem:[%s1579_s28 + $0x70] ss:$8 sps:$4 sm:$0xff]   ;;  %v1485_v48 = vld [vmem:[%s1579_s28 + $0x140] ss:$8 sps:$4 sm:$0xff]   ;;  %v1486_v49 = vld [vmem:[%s1579_s28 + $0x84] ss:$8 sps:$4 sm:$0xff]  }
  0x1b   : > { %624 = vmatpush1.bf16.msra.mxu0 %v1427_v7  ;;  %1402 = vmatpush1.bf16.msra.mxu1 %v1427_v7  ;;  %v1489_v50 = vld [vmem:[%s1579_s28 + $0x154] ss:$8 sps:$4 sm:$0xff]   ;;  %v1488_v51 = vld [vmem:[%s1579_s28 + $0x80] ss:$8 sps:$4 sm:$0xff]   ;;  %v1491_v52 = vld [vmem:[%s1579_s28 + $0x150] ss:$8 sps:$4 sm:$0xff]  }
  0x1c   : > { %625 = vmatprep.subr.bf16.mxu0 %v1521_v1  ;;  %1387 = vmatprep.subr.bf16.mxu1 %v1521_v1  ;;  %v1492_v53 = vld [vmem:[%s1579_s28 + $0x94] ss:$8 sps:$4 sm:$0xff]   ;;  %v1495_v54 = vld [vmem:[%s1579_s28 + $0x164] ss:$8 sps:$4 sm:$0xff]   ;;  %v1494_v55 = vld [vmem:[%s1579_s28 + $0x90] ss:$8 sps:$4 sm:$0xff]  }
  0x1d   : > { %v1497_v56 = vld [vmem:[%s1579_s28 + $0x160] ss:$8 sps:$4 sm:$0xff]   ;;  %v1498_v57 = vld [vmem:[%s1579_s28 + $0xa4] ss:$8 sps:$4 sm:$0xff]   ;;  %v1501_v58 = vld [vmem:[%s1579_s28 + $0x174] ss:$8 sps:$4 sm:$0xff]  }
  0x1e   : > { %v1500_v59 = vld [vmem:[%s1579_s28 + $0xa0] ss:$8 sps:$4 sm:$0xff]   ;;  %v1503_v60 = vld [vmem:[%s1579_s28 + $0x170] ss:$8 sps:$4 sm:$0xff]   ;;  %v1504_v61 = vld [vmem:[%s1579_s28 + $0xb4] ss:$8 sps:$4 sm:$0xff]  }
  0x1f   : > { %626 = vmatpush1.bf16.msra.mxu0 %v1428_v9  ;;  %1403 = vmatpush1.bf16.msra.mxu1 %v1428_v9  ;;  %v1507_v62 = vld [vmem:[%s1579_s28 + $0x184] ss:$8 sps:$4 sm:$0xff]   ;;  %v1506_v63 = vld [vmem:[%s1579_s28 + $0xb0] ss:$8 sps:$4 sm:$0xff]   ;;  %v1509_v0 = vld [vmem:[%s1579_s28 + $0x180] ss:$8 sps:$4 sm:$0xff]  }
  0x20   : > { %627 = vmatprep.subr.bf16.mxu0 %v1521_v1  ;;  %1388 = vmatprep.subr.bf16.mxu1 %v1521_v1  ;;  %v1512_v2 = vld [vmem:[%s1579_s28 + $0xc0] ss:$8 sps:$4 sm:$0xff]  }
  0x23   : > { %628 = vmatpush1.bf16.msra.mxu0 %v1429_v10  ;;  %1404 = vmatpush1.bf16.msra.mxu1 %v1429_v10 }
  0x24   : > { %629 = vmatprep.subr.bf16.mxu0 %v1521_v1  ;;  %1389 = vmatprep.subr.bf16.mxu1 %v1521_v1 }
  0x27   : > { %630 = vmatpush1.bf16.msra.mxu0 %v1430_v11  ;;  %1405 = vmatpush1.bf16.msra.mxu1 %v1430_v11 }
  0x28   : > { %631 = vmatprep.subr.bf16.mxu0 %v1521_v1  ;;  %1390 = vmatprep.subr.bf16.mxu1 %v1521_v1 }
  0x2b   : > { %632 = vmatpush1.bf16.msra.mxu0 %v1431_v12  ;;  %1406 = vmatpush1.bf16.msra.mxu1 %v1431_v12 }
  0x2c   : > { %633 = vmatprep.subr.bf16.mxu0 %v1521_v1  ;;  %1391 = vmatprep.subr.bf16.mxu1 %v1521_v1 }
  0x2f   : > { %634 = vmatpush1.bf16.msra.mxu0 %v1432_v13  ;;  %1407 = vmatpush1.bf16.msra.mxu1 %v1432_v13 }
  0x30   : > { %635 = vmatprep.subr.bf16.mxu0 %v1521_v1  ;;  %1392 = vmatprep.subr.bf16.mxu1 %v1521_v1 }
  0x33   : > { %636 = vmatpush1.bf16.msra.mxu0 %v1433_v14  ;;  %1408 = vmatpush1.bf16.msra.mxu1 %v1433_v14 }
  0x34   : > { %637 = vmatprep.subr.bf16.mxu0 %v1521_v1  ;;  %1393 = vmatprep.subr.bf16.mxu1 %v1521_v1 }
  0x37   : > { %638 = vmatpush1.bf16.msra.mxu0 %v1434_v15  ;;  %1409 = vmatpush1.bf16.msra.mxu1 %v1434_v15 }
  0x38   : > { %639 = vmatprep.subr.bf16.mxu0 %v1521_v1  ;;  %1394 = vmatprep.subr.bf16.mxu1 %v1521_v1 }
  0x3b   : > { %640 = vmatpush1.bf16.msra.mxu0 %v1435_v16  ;;  %1410 = vmatpush1.bf16.msra.mxu1 %v1435_v16 }
  0x3c   : > { %641 = vmatprep.subr.bf16.mxu0 %v1521_v1  ;;  %1395 = vmatprep.subr.bf16.mxu1 %v1521_v1 }
  0x3f   : > { %642 = vmatpush1.bf16.msra.mxu0 %v1436_v17  ;;  %1411 = vmatpush1.bf16.msra.mxu1 %v1436_v17 }
  0x40   : > { %643 = vmatprep.subr.bf16.mxu0 %v1521_v1  ;;  %1396 = vmatprep.subr.bf16.mxu1 %v1521_v1  ;;  %v1510_v1 = vld [vmem:[%s1579_s28 + $0xc4] ss:$8 sps:$4 sm:$0xff]  }
  0x43   : > { %644 = vmatpush1.bf16.msra.mxu0 %v1437_v18  ;;  %1412 = vmatpush1.bf16.msra.mxu1 %v1437_v18 }
  0x46   : > { %646 = vmatmul.mubr.bf16.vlgmr.msra.gmra.mrb[0].mxu0 %v1438_v19  ;;  %750 = vmatmul.mubr.bf16.vlgmr.msra.gmra.mrb[0].mxu1 %v1441_v20 }
  0x47   : > { %653 = vmatprep.mubr.bf16.mxu0 %v1444_v21  ;;  %757 = vmatprep.mubr.bf16.mxu1 %v1447_v22 }
  0x4e   : > { %654 = vmatmul.mubr.bf16.gmra.mrb[4].mxu0 %v1446_v23  ;;  %758 = vmatmul.mubr.bf16.gmra.mrb[4].mxu1 %v1449_v24 }
  0x4f   : > { %661 = vmatprep.mubr.bf16.mxu0 %v1450_v25  ;;  %765 = vmatprep.mubr.bf16.mxu1 %v1453_v26 }
  0x56   : > { %662 = vmatmul.mubr.bf16.gmra.mrb[8].mxu0 %v1452_v27  ;;  %766 = vmatmul.mubr.bf16.gmra.mrb[8].mxu1 %v1455_v28 }
  0x57   : > { %669 = vmatprep.mubr.bf16.mxu0 %v1456_v29  ;;  %773 = vmatprep.mubr.bf16.mxu1 %v1459_v30 }
  0x5e   : > { %670 = vmatmul.mubr.bf16.gmra.mrb[12].mxu0 %v1458_v31  ;;  %774 = vmatmul.mubr.bf16.gmra.mrb[12].mxu1 %v1461_v32 }
  0x5f   : > { %677 = vmatprep.mubr.bf16.mxu0 %v1462_v33  ;;  %781 = vmatprep.mubr.bf16.mxu1 %v1465_v34 }
  0x66   : > { %678 = vmatmul.mubr.bf16.gmra.mrb[16].mxu0 %v1464_v35  ;;  %782 = vmatmul.mubr.bf16.gmra.mrb[16].mxu1 %v1467_v36 }
  0x67   : > { %685 = vmatprep.mubr.bf16.mxu0 %v1468_v37  ;;  %789 = vmatprep.mubr.bf16.mxu1 %v1471_v38 }
  0x6e   : > { %686 = vmatmul.mubr.bf16.gmra.mrb[20].mxu0 %v1470_v39  ;;  %790 = vmatmul.mubr.bf16.gmra.mrb[20].mxu1 %v1473_v40 }
  0x6f   : > { %693 = vmatprep.mubr.bf16.mxu0 %v1474_v41  ;;  %797 = vmatprep.mubr.bf16.mxu1 %v1477_v42 }
  0x76   : > { %694 = vmatmul.mubr.bf16.gmra.mrb[24].mxu0 %v1476_v43  ;;  %798 = vmatmul.mubr.bf16.gmra.mrb[24].mxu1 %v1479_v44 }
  0x77   : > { %701 = vmatprep.mubr.bf16.mxu0 %v1480_v45  ;;  %805 = vmatprep.mubr.bf16.mxu1 %v1483_v46 }
  0x7e   : > { %702 = vmatmul.mubr.bf16.gmra.mrb[28].mxu0 %v1482_v47  ;;  %806 = vmatmul.mubr.bf16.gmra.mrb[28].mxu1 %v1485_v48 }
  0x7f   : > { %709 = vmatprep.mubr.bf16.mxu0 %v1486_v49  ;;  %813 = vmatprep.mubr.bf16.mxu1 %v1489_v50 }
  0x86   : > { %710 = vmatmul.mubr.bf16.gmra.mrb[32].mxu0 %v1488_v51  ;;  %814 = vmatmul.mubr.bf16.gmra.mrb[32].mxu1 %v1491_v52 }
  0x87   : > { %717 = vmatprep.mubr.bf16.mxu0 %v1492_v53  ;;  %821 = vmatprep.mubr.bf16.mxu1 %v1495_v54 }
  0x8e   : > { %718 = vmatmul.mubr.bf16.gmra.mrb[36].mxu0 %v1494_v55  ;;  %822 = vmatmul.mubr.bf16.gmra.mrb[36].mxu1 %v1497_v56 }
  0x8f   : > { %725 = vmatprep.mubr.bf16.mxu0 %v1498_v57  ;;  %829 = vmatprep.mubr.bf16.mxu1 %v1501_v58 }
  0x96   : > { %726 = vmatmul.mubr.bf16.gmra.mrb[40].mxu0 %v1500_v59  ;;  %830 = vmatmul.mubr.bf16.gmra.mrb[40].mxu1 %v1503_v60 }
  0x97   : > { %733 = vmatprep.mubr.bf16.mxu0 %v1504_v61  ;;  %837 = vmatprep.mubr.bf16.mxu1 %v1507_v62 }
  0x9e   : > { %734 = vmatmul.mubr.bf16.gmra.mrb[44].mxu0 %v1506_v63  ;;  %838 = vmatmul.mubr.bf16.gmra.mrb[44].mxu1 %v1509_v0 }
  0x9f   : > { %741 = vmatprep.mubr.bf16.mxu0 %v1510_v1 }
  0xa6   : > { %742 = vmatmul.mubr.bf16.gmra.mrb[48].mxu0 %v1512_v2 }
 0x119   : > { %v647_v4 = vpop.f32.mrb[0].mxu0  ;;  %v751_v5 = vpop.f32.mrb[0].mxu1 }
 0x11a   : > { %v648_v6 = vadd.f32 %v1691_v3, %v647_v4  ;;  %v649_v7 = vpop.f32.mrb[1].mxu0  ;;  %v752_v8 = vadd.f32 %v1691_v3, %v751_v5  ;;  %v753_v9 = vpop.f32.mrb[1].mxu1 }
 0x11b   : > { %v650_v10 = vpop.f32.mrb[2].mxu0  ;;  %v754_v11 = vpop.f32.mrb[2].mxu1 }
 0x11c   : > { %v846_v12 = vmax.f32 %v648_v6, 0.0  ;;  %v651_v13 = vadd.f32 %v1691_v3, %v650_v10  ;;  %v652_v14 = vpop.f32.mrb[3].mxu0  ;;  %v872_v15 = vmax.f32 %v752_v8, 0.0  ;;  %v755_v16 = vadd.f32 %v1691_v3, %v754_v11  ;;  %v756_v17 = vpop.f32.mrb[3].mxu1 }
 0x11e   : > { %v1331_v18 = vpack.c.bf16 %v846_v12, %v846_v12  ;;  %v847_v19 = vmax.f32 %v651_v13, 0.0  ;;  %v1357_v20 = vpack.c.bf16 %v872_v15, %v872_v15  ;;  %v873_v21 = vmax.f32 %v755_v16, 0.0 }
 0x120   : > { %1097 = vst.msk [vmem:[%s1701_s16] sm:$0xf] %vm1096_vm0, %v1331_v18  ;;  %v1332_v22 = vpack.c.bf16 %v847_v19, %v847_v19  ;;  %1123 = vst.msk [vmem:[%s1701_s16 + $0x68] sm:$0xf] %vm1096_vm0, %v1357_v20  ;;  %v1358_v23 = vpack.c.bf16 %v873_v21, %v873_v21 }
 0x121   : > { %v655_v24 = vpop.f32.mrb[4].mxu0  ;;  %v759_v25 = vpop.f32.mrb[4].mxu1 }
 0x122   : > { %1098 = vst.msk [vmem:[%s1701_s16 + $0x4] sm:$0xf] %vm1096_vm0, %v1332_v22  ;;  %1124 = vst.msk [vmem:[%s1701_s16 + $0x6c] sm:$0xf] %vm1096_vm0, %v1358_v23  ;;  %v656_v26 = vadd.f32 %v1691_v3, %v655_v24  ;;  %v657_v27 = vpop.f32.mrb[5].mxu0  ;;  %v760_v28 = vadd.f32 %v1691_v3, %v759_v25  ;;  %v761_v29 = vpop.f32.mrb[5].mxu1 }
 0x123   : > { %v658_v30 = vpop.f32.mrb[6].mxu0  ;;  %v762_v31 = vpop.f32.mrb[6].mxu1 }
 0x124   : > { %v848_v32 = vmax.f32 %v656_v26, 0.0  ;;  %v659_v33 = vadd.f32 %v1691_v3, %v658_v30  ;;  %v660_v34 = vpop.f32.mrb[7].mxu0  ;;  %v874_v35 = vmax.f32 %v760_v28, 0.0  ;;  %v763_v36 = vadd.f32 %v1691_v3, %v762_v31  ;;  %v764_v37 = vpop.f32.mrb[7].mxu1 }
 0x126   : > { %v1333_v38 = vpack.c.bf16 %v848_v32, %v848_v32  ;;  %v849_v39 = vmax.f32 %v659_v33, 0.0  ;;  %v1359_v40 = vpack.c.bf16 %v874_v35, %v874_v35  ;;  %v875_v41 = vmax.f32 %v763_v36, 0.0 }
 0x128   : > { %1099 = vst.msk [vmem:[%s1701_s16 + $0x8] sm:$0xf] %vm1096_vm0, %v1333_v38  ;;  %v1334_v42 = vpack.c.bf16 %v849_v39, %v849_v39  ;;  %1125 = vst.msk [vmem:[%s1701_s16 + $0x70] sm:$0xf] %vm1096_vm0, %v1359_v40  ;;  %v1360_v43 = vpack.c.bf16 %v875_v41, %v875_v41 }
 0x129   : > { %v663_v44 = vpop.f32.mrb[8].mxu0  ;;  %v767_v45 = vpop.f32.mrb[8].mxu1 }
 0x12a   : > { %1100 = vst.msk [vmem:[%s1701_s16 + $0xc] sm:$0xf] %vm1096_vm0, %v1334_v42  ;;  %1126 = vst.msk [vmem:[%s1701_s16 + $0x74] sm:$0xf] %vm1096_vm0, %v1360_v43  ;;  %v664_v46 = vadd.f32 %v1691_v3, %v663_v44  ;;  %v665_v47 = vpop.f32.mrb[9].mxu0  ;;  %v768_v48 = vadd.f32 %v1691_v3, %v767_v45  ;;  %v769_v49 = vpop.f32.mrb[9].mxu1 }
 0x12b   : > { %v666_v50 = vpop.f32.mrb[10].mxu0  ;;  %v770_v51 = vpop.f32.mrb[10].mxu1 }
 0x12c   : > { %v850_v52 = vmax.f32 %v664_v46, 0.0  ;;  %v667_v53 = vadd.f32 %v1691_v3, %v666_v50  ;;  %v668_v54 = vpop.f32.mrb[11].mxu0  ;;  %v876_v55 = vmax.f32 %v768_v48, 0.0  ;;  %v771_v56 = vadd.f32 %v1691_v3, %v770_v51  ;;  %v772_v57 = vpop.f32.mrb[11].mxu1 }
 0x12e   : > { %v1335_v58 = vpack.c.bf16 %v850_v52, %v850_v52  ;;  %v851_v59 = vmax.f32 %v667_v53, 0.0  ;;  %v1361_v60 = vpack.c.bf16 %v876_v55, %v876_v55  ;;  %v877_v61 = vmax.f32 %v771_v56, 0.0 }
 0x130   : > { %1101 = vst.msk [vmem:[%s1701_s16 + $0x10] sm:$0xf] %vm1096_vm0, %v1335_v58  ;;  %v1336_v62 = vpack.c.bf16 %v851_v59, %v851_v59  ;;  %1127 = vst.msk [vmem:[%s1701_s16 + $0x78] sm:$0xf] %vm1096_vm0, %v1361_v60  ;;  %v1362_v63 = vpack.c.bf16 %v877_v61, %v877_v61 }
 0x131   : > { %v671_v0 = vpop.f32.mrb[12].mxu0  ;;  %v775_v1 = vpop.f32.mrb[12].mxu1 }
 0x132   : > { %1102 = vst.msk [vmem:[%s1701_s16 + $0x14] sm:$0xf] %vm1096_vm0, %v1336_v62  ;;  %1128 = vst.msk [vmem:[%s1701_s16 + $0x7c] sm:$0xf] %vm1096_vm0, %v1362_v63  ;;  %v672_v2 = vadd.f32 %v1691_v3, %v671_v0  ;;  %v673_v4 = vpop.f32.mrb[13].mxu0  ;;  %v776_v5 = vadd.f32 %v1691_v3, %v775_v1  ;;  %v777_v6 = vpop.f32.mrb[13].mxu1 }
 0x133   : > { %v674_v7 = vpop.f32.mrb[14].mxu0  ;;  %v778_v8 = vpop.f32.mrb[14].mxu1 }
 0x134   : > { %v852_v9 = vmax.f32 %v672_v2, 0.0  ;;  %v675_v10 = vadd.f32 %v1691_v3, %v674_v7  ;;  %v676_v11 = vpop.f32.mrb[15].mxu0  ;;  %v878_v12 = vmax.f32 %v776_v5, 0.0  ;;  %v779_v13 = vadd.f32 %v1691_v3, %v778_v8  ;;  %v780_v14 = vpop.f32.mrb[15].mxu1 }
 0x136   : > { %v1337_v15 = vpack.c.bf16 %v852_v9, %v852_v9  ;;  %v853_v16 = vmax.f32 %v675_v10, 0.0  ;;  %v1363_v17 = vpack.c.bf16 %v878_v12, %v878_v12  ;;  %v879_v18 = vmax.f32 %v779_v13, 0.0 }
 0x138   : > { %1103 = vst.msk [vmem:[%s1701_s16 + $0x18] sm:$0xf] %vm1096_vm0, %v1337_v15  ;;  %v1338_v19 = vpack.c.bf16 %v853_v16, %v853_v16  ;;  %1129 = vst.msk [vmem:[%s1701_s16 + $0x80] sm:$0xf] %vm1096_vm0, %v1363_v17  ;;  %v1364_v20 = vpack.c.bf16 %v879_v18, %v879_v18 }
 0x139   : > { %v679_v21 = vpop.f32.mrb[16].mxu0  ;;  %v783_v22 = vpop.f32.mrb[16].mxu1 }
 0x13a   : > { %1104 = vst.msk [vmem:[%s1701_s16 + $0x1c] sm:$0xf] %vm1096_vm0, %v1338_v19  ;;  %1130 = vst.msk [vmem:[%s1701_s16 + $0x84] sm:$0xf] %vm1096_vm0, %v1364_v20  ;;  %v680_v23 = vadd.f32 %v1691_v3, %v679_v21  ;;  %v681_v24 = vpop.f32.mrb[17].mxu0  ;;  %v784_v25 = vadd.f32 %v1691_v3, %v783_v22  ;;  %v785_v26 = vpop.f32.mrb[17].mxu1 }
 0x13b   : > { %v682_v27 = vpop.f32.mrb[18].mxu0  ;;  %v786_v28 = vpop.f32.mrb[18].mxu1 }
 0x13c   : > { %v854_v29 = vmax.f32 %v680_v23, 0.0  ;;  %v683_v30 = vadd.f32 %v1691_v3, %v682_v27  ;;  %v684_v31 = vpop.f32.mrb[19].mxu0  ;;  %v880_v32 = vmax.f32 %v784_v25, 0.0  ;;  %v787_v33 = vadd.f32 %v1691_v3, %v786_v28  ;;  %v788_v34 = vpop.f32.mrb[19].mxu1 }
 0x13e   : > { %v1339_v35 = vpack.c.bf16 %v854_v29, %v854_v29  ;;  %v855_v36 = vmax.f32 %v683_v30, 0.0  ;;  %v1365_v37 = vpack.c.bf16 %v880_v32, %v880_v32  ;;  %v881_v38 = vmax.f32 %v787_v33, 0.0 }
 0x140   : > { %1105 = vst.msk [vmem:[%s1701_s16 + $0x20] sm:$0xf] %vm1096_vm0, %v1339_v35  ;;  %v1340_v39 = vpack.c.bf16 %v855_v36, %v855_v36  ;;  %1131 = vst.msk [vmem:[%s1701_s16 + $0x88] sm:$0xf] %vm1096_vm0, %v1365_v37  ;;  %v1366_v40 = vpack.c.bf16 %v881_v38, %v881_v38 }
 0x141   : > { %v687_v41 = vpop.f32.mrb[20].mxu0  ;;  %v791_v42 = vpop.f32.mrb[20].mxu1 }
 0x142   : > { %1106 = vst.msk [vmem:[%s1701_s16 + $0x24] sm:$0xf] %vm1096_vm0, %v1340_v39  ;;  %1132 = vst.msk [vmem:[%s1701_s16 + $0x8c] sm:$0xf] %vm1096_vm0, %v1366_v40  ;;  %v688_v43 = vadd.f32 %v1691_v3, %v687_v41  ;;  %v689_v44 = vpop.f32.mrb[21].mxu0  ;;  %v792_v45 = vadd.f32 %v1691_v3, %v791_v42  ;;  %v793_v46 = vpop.f32.mrb[21].mxu1 }
 0x143   : > { %v690_v47 = vpop.f32.mrb[22].mxu0  ;;  %v794_v48 = vpop.f32.mrb[22].mxu1 }
 0x144   : > { %v856_v49 = vmax.f32 %v688_v43, 0.0  ;;  %v691_v50 = vadd.f32 %v1691_v3, %v690_v47  ;;  %v692_v51 = vpop.f32.mrb[23].mxu0  ;;  %v882_v52 = vmax.f32 %v792_v45, 0.0  ;;  %v795_v53 = vadd.f32 %v1691_v3, %v794_v48  ;;  %v796_v54 = vpop.f32.mrb[23].mxu1 }
 0x146   : > { %v1341_v55 = vpack.c.bf16 %v856_v49, %v856_v49  ;;  %v857_v56 = vmax.f32 %v691_v50, 0.0  ;;  %v1367_v57 = vpack.c.bf16 %v882_v52, %v882_v52  ;;  %v883_v58 = vmax.f32 %v795_v53, 0.0 }
 0x148   : > { %1107 = vst.msk [vmem:[%s1701_s16 + $0x28] sm:$0xf] %vm1096_vm0, %v1341_v55  ;;  %v1342_v59 = vpack.c.bf16 %v857_v56, %v857_v56  ;;  %1133 = vst.msk [vmem:[%s1701_s16 + $0x90] sm:$0xf] %vm1096_vm0, %v1367_v57  ;;  %v1368_v60 = vpack.c.bf16 %v883_v58, %v883_v58 }
 0x149   : > { %v695_v61 = vpop.f32.mrb[24].mxu0  ;;  %v799_v62 = vpop.f32.mrb[24].mxu1 }
 0x14a   : > { %1108 = vst.msk [vmem:[%s1701_s16 + $0x2c] sm:$0xf] %vm1096_vm0, %v1342_v59  ;;  %1134 = vst.msk [vmem:[%s1701_s16 + $0x94] sm:$0xf] %vm1096_vm0, %v1368_v60  ;;  %v696_v63 = vadd.f32 %v1691_v3, %v695_v61  ;;  %v697_v0 = vpop.f32.mrb[25].mxu0  ;;  %v800_v1 = vadd.f32 %v1691_v3, %v799_v62  ;;  %v801_v2 = vpop.f32.mrb[25].mxu1 }
 0x14b   : > { %v698_v4 = vpop.f32.mrb[26].mxu0  ;;  %v802_v5 = vpop.f32.mrb[26].mxu1 }
 0x14c   : > { %v858_v6 = vmax.f32 %v696_v63, 0.0  ;;  %v699_v7 = vadd.f32 %v1691_v3, %v698_v4  ;;  %v700_v8 = vpop.f32.mrb[27].mxu0  ;;  %v884_v9 = vmax.f32 %v800_v1, 0.0  ;;  %v803_v10 = vadd.f32 %v1691_v3, %v802_v5  ;;  %v804_v11 = vpop.f32.mrb[27].mxu1 }
 0x14e   : > { %v1343_v12 = vpack.c.bf16 %v858_v6, %v858_v6  ;;  %v859_v13 = vmax.f32 %v699_v7, 0.0  ;;  %v1369_v14 = vpack.c.bf16 %v884_v9, %v884_v9  ;;  %v885_v15 = vmax.f32 %v803_v10, 0.0 }
 0x150   : > { %1109 = vst.msk [vmem:[%s1701_s16 + $0x30] sm:$0xf] %vm1096_vm0, %v1343_v12  ;;  %v1344_v16 = vpack.c.bf16 %v859_v13, %v859_v13  ;;  %1135 = vst.msk [vmem:[%s1701_s16 + $0x98] sm:$0xf] %vm1096_vm0, %v1369_v14  ;;  %v1370_v17 = vpack.c.bf16 %v885_v15, %v885_v15 }
 0x151   : > { %v703_v18 = vpop.f32.mrb[28].mxu0  ;;  %v807_v19 = vpop.f32.mrb[28].mxu1 }
 0x152   : > { %1110 = vst.msk [vmem:[%s1701_s16 + $0x34] sm:$0xf] %vm1096_vm0, %v1344_v16  ;;  %1136 = vst.msk [vmem:[%s1701_s16 + $0x9c] sm:$0xf] %vm1096_vm0, %v1370_v17  ;;  %v704_v20 = vadd.f32 %v1691_v3, %v703_v18  ;;  %v705_v21 = vpop.f32.mrb[29].mxu0  ;;  %v808_v22 = vadd.f32 %v1691_v3, %v807_v19  ;;  %v809_v23 = vpop.f32.mrb[29].mxu1 }
 0x153   : > { %v706_v24 = vpop.f32.mrb[30].mxu0  ;;  %v810_v25 = vpop.f32.mrb[30].mxu1 }
 0x154   : > { %v860_v26 = vmax.f32 %v704_v20, 0.0  ;;  %v707_v27 = vadd.f32 %v1691_v3, %v706_v24  ;;  %v708_v28 = vpop.f32.mrb[31].mxu0  ;;  %v886_v29 = vmax.f32 %v808_v22, 0.0  ;;  %v811_v30 = vadd.f32 %v1691_v3, %v810_v25  ;;  %v812_v31 = vpop.f32.mrb[31].mxu1 }
 0x156   : > { %v1345_v32 = vpack.c.bf16 %v860_v26, %v860_v26  ;;  %v861_v33 = vmax.f32 %v707_v27, 0.0  ;;  %v1371_v34 = vpack.c.bf16 %v886_v29, %v886_v29  ;;  %v887_v35 = vmax.f32 %v811_v30, 0.0 }
 0x158   : > { %1111 = vst.msk [vmem:[%s1701_s16 + $0x38] sm:$0xf] %vm1096_vm0, %v1345_v32  ;;  %v1346_v36 = vpack.c.bf16 %v861_v33, %v861_v33  ;;  %1137 = vst.msk [vmem:[%s1701_s16 + $0xa0] sm:$0xf] %vm1096_vm0, %v1371_v34  ;;  %v1372_v37 = vpack.c.bf16 %v887_v35, %v887_v35 }
 0x159   : > { %v711_v38 = vpop.f32.mrb[32].mxu0  ;;  %v815_v39 = vpop.f32.mrb[32].mxu1 }
 0x15a   : > { %1112 = vst.msk [vmem:[%s1701_s16 + $0x3c] sm:$0xf] %vm1096_vm0, %v1346_v36  ;;  %1138 = vst.msk [vmem:[%s1701_s16 + $0xa4] sm:$0xf] %vm1096_vm0, %v1372_v37  ;;  %v712_v40 = vadd.f32 %v1691_v3, %v711_v38  ;;  %v713_v41 = vpop.f32.mrb[33].mxu0  ;;  %v816_v42 = vadd.f32 %v1691_v3, %v815_v39  ;;  %v817_v43 = vpop.f32.mrb[33].mxu1 }
 0x15b   : > { %v714_v44 = vpop.f32.mrb[34].mxu0  ;;  %v818_v45 = vpop.f32.mrb[34].mxu1 }
 0x15c   : > { %v862_v46 = vmax.f32 %v712_v40, 0.0  ;;  %v715_v47 = vadd.f32 %v1691_v3, %v714_v44  ;;  %v716_v48 = vpop.f32.mrb[35].mxu0  ;;  %v888_v49 = vmax.f32 %v816_v42, 0.0  ;;  %v819_v50 = vadd.f32 %v1691_v3, %v818_v45  ;;  %v820_v51 = vpop.f32.mrb[35].mxu1 }
 0x15e   : > { %v1347_v52 = vpack.c.bf16 %v862_v46, %v862_v46  ;;  %v863_v53 = vmax.f32 %v715_v47, 0.0  ;;  %v1373_v54 = vpack.c.bf16 %v888_v49, %v888_v49  ;;  %v889_v55 = vmax.f32 %v819_v50, 0.0 }
 0x160   : > { %1113 = vst.msk [vmem:[%s1701_s16 + $0x40] sm:$0xf] %vm1096_vm0, %v1347_v52  ;;  %v1348_v56 = vpack.c.bf16 %v863_v53, %v863_v53  ;;  %1139 = vst.msk [vmem:[%s1701_s16 + $0xa8] sm:$0xf] %vm1096_vm0, %v1373_v54  ;;  %v1374_v57 = vpack.c.bf16 %v889_v55, %v889_v55 }
 0x161   : > { %v719_v58 = vpop.f32.mrb[36].mxu0  ;;  %v823_v59 = vpop.f32.mrb[36].mxu1 }
 0x162   : > { %1114 = vst.msk [vmem:[%s1701_s16 + $0x44] sm:$0xf] %vm1096_vm0, %v1348_v56  ;;  %1140 = vst.msk [vmem:[%s1701_s16 + $0xac] sm:$0xf] %vm1096_vm0, %v1374_v57  ;;  %v720_v60 = vadd.f32 %v1691_v3, %v719_v58  ;;  %v721_v61 = vpop.f32.mrb[37].mxu0  ;;  %v824_v62 = vadd.f32 %v1691_v3, %v823_v59  ;;  %v825_v63 = vpop.f32.mrb[37].mxu1 }
 0x163   : > { %v722_v0 = vpop.f32.mrb[38].mxu0  ;;  %v826_v1 = vpop.f32.mrb[38].mxu1 }
 0x164   : > { %v864_v2 = vmax.f32 %v720_v60, 0.0  ;;  %v723_v4 = vadd.f32 %v1691_v3, %v722_v0  ;;  %v724_v5 = vpop.f32.mrb[39].mxu0  ;;  %v890_v6 = vmax.f32 %v824_v62, 0.0  ;;  %v827_v7 = vadd.f32 %v1691_v3, %v826_v1  ;;  %v828_v8 = vpop.f32.mrb[39].mxu1 }
 0x166   : > { %v1349_v9 = vpack.c.bf16 %v864_v2, %v864_v2  ;;  %v865_v10 = vmax.f32 %v723_v4, 0.0  ;;  %v1375_v11 = vpack.c.bf16 %v890_v6, %v890_v6  ;;  %v891_v12 = vmax.f32 %v827_v7, 0.0 }
 0x168   : > { %1115 = vst.msk [vmem:[%s1701_s16 + $0x48] sm:$0xf] %vm1096_vm0, %v1349_v9  ;;  %v1350_v13 = vpack.c.bf16 %v865_v10, %v865_v10  ;;  %1141 = vst.msk [vmem:[%s1701_s16 + $0xb0] sm:$0xf] %vm1096_vm0, %v1375_v11  ;;  %v1376_v14 = vpack.c.bf16 %v891_v12, %v891_v12 }
 0x169   : > { %v727_v15 = vpop.f32.mrb[40].mxu0  ;;  %v831_v16 = vpop.f32.mrb[40].mxu1 }
 0x16a   : > { %1116 = vst.msk [vmem:[%s1701_s16 + $0x4c] sm:$0xf] %vm1096_vm0, %v1350_v13  ;;  %1142 = vst.msk [vmem:[%s1701_s16 + $0xb4] sm:$0xf] %vm1096_vm0, %v1376_v14  ;;  %v728_v17 = vadd.f32 %v1691_v3, %v727_v15  ;;  %v729_v18 = vpop.f32.mrb[41].mxu0  ;;  %v832_v19 = vadd.f32 %v1691_v3, %v831_v16  ;;  %v833_v20 = vpop.f32.mrb[41].mxu1 }
 0x16b   : > { %v730_v21 = vpop.f32.mrb[42].mxu0  ;;  %v834_v22 = vpop.f32.mrb[42].mxu1 }
 0x16c   : > { %v866_v23 = vmax.f32 %v728_v17, 0.0  ;;  %v731_v24 = vadd.f32 %v1691_v3, %v730_v21  ;;  %v732_v25 = vpop.f32.mrb[43].mxu0  ;;  %v892_v26 = vmax.f32 %v832_v19, 0.0  ;;  %v835_v27 = vadd.f32 %v1691_v3, %v834_v22  ;;  %v836_v28 = vpop.f32.mrb[43].mxu1 }
 0x16e   : > { %v1351_v29 = vpack.c.bf16 %v866_v23, %v866_v23  ;;  %v867_v30 = vmax.f32 %v731_v24, 0.0  ;;  %v1377_v31 = vpack.c.bf16 %v892_v26, %v892_v26  ;;  %v893_v32 = vmax.f32 %v835_v27, 0.0 }
 0x170   : > { %1117 = vst.msk [vmem:[%s1701_s16 + $0x50] sm:$0xf] %vm1096_vm0, %v1351_v29  ;;  %v1352_v33 = vpack.c.bf16 %v867_v30, %v867_v30  ;;  %1143 = vst.msk [vmem:[%s1701_s16 + $0xb8] sm:$0xf] %vm1096_vm0, %v1377_v31  ;;  %v1378_v34 = vpack.c.bf16 %v893_v32, %v893_v32 }
 0x171   : > { %v735_v35 = vpop.f32.mrb[44].mxu0  ;;  %v839_v36 = vpop.f32.mrb[44].mxu1 }
 0x172   : > { %1118 = vst.msk [vmem:[%s1701_s16 + $0x54] sm:$0xf] %vm1096_vm0, %v1352_v33  ;;  %1144 = vst.msk [vmem:[%s1701_s16 + $0xbc] sm:$0xf] %vm1096_vm0, %v1378_v34  ;;  %v736_v37 = vadd.f32 %v1691_v3, %v735_v35  ;;  %v737_v38 = vpop.f32.mrb[45].mxu0  ;;  %v840_v39 = vadd.f32 %v1691_v3, %v839_v36  ;;  %v841_v40 = vpop.f32.mrb[45].mxu1 }
 0x173   : > { %v738_v41 = vpop.f32.mrb[46].mxu0  ;;  %v842_v42 = vpop.f32.mrb[46].mxu1 }
 0x174   : > { %v868_v43 = vmax.f32 %v736_v37, 0.0  ;;  %v739_v44 = vadd.f32 %v1691_v3, %v738_v41  ;;  %v740_v45 = vpop.f32.mrb[47].mxu0  ;;  %v894_v46 = vmax.f32 %v840_v39, 0.0  ;;  %v843_v47 = vadd.f32 %v1691_v3, %v842_v42  ;;  %v844_v48 = vpop.f32.mrb[47].mxu1 }
 0x176   : > { %v1353_v49 = vpack.c.bf16 %v868_v43, %v868_v43  ;;  %v869_v50 = vmax.f32 %v739_v44, 0.0  ;;  %v1379_v51 = vpack.c.bf16 %v894_v46, %v894_v46  ;;  %v895_v52 = vmax.f32 %v843_v47, 0.0 }
 0x178   : > { %1119 = vst.msk [vmem:[%s1701_s16 + $0x58] sm:$0xf] %vm1096_vm0, %v1353_v49  ;;  %v1354_v53 = vpack.c.bf16 %v869_v50, %v869_v50  ;;  %1145 = vst.msk [vmem:[%s1701_s16 + $0xc0] sm:$0xf] %vm1096_vm0, %v1379_v51  ;;  %v1380_v54 = vpack.c.bf16 %v895_v52, %v895_v52 }
 0x179   : > { %v743_v55 = vpop.f32.mrb[48].mxu0 }
 0x17a   : > { %1120 = vst.msk [vmem:[%s1701_s16 + $0x5c] sm:$0xf] %vm1096_vm0, %v1354_v53  ;;  %1146 = vst.msk [vmem:[%s1701_s16 + $0xc4] sm:$0xf] %vm1096_vm0, %v1380_v54  ;;  %v744_v56 = vadd.f32 %v1691_v3, %v743_v55  ;;  %v745_v57 = vpop.f32.mrb[49].mxu0 }
 0x17b   : > { %v746_v58 = vpop.f32.mrb[50].mxu0 }
 0x17c   : > { %v870_v59 = vmax.f32 %v744_v56, 0.0  ;;  %v747_v60 = vadd.f32 %v1691_v3, %v746_v58  ;;  %v748_v61 = vpop.f32.mrb[51].mxu0 }
 0x17e   : > { %v1355_v62 = vpack.c.bf16 %v870_v59, %v870_v59  ;;  %v871_v63 = vmax.f32 %v747_v60, 0.0 }
 0x180   : > { %1121 = vst.msk [vmem:[%s1701_s16 + $0x60] sm:$0xf] %vm1096_vm0, %v1355_v62  ;;  %v1356_v0 = vpack.c.bf16 %v871_v63, %v871_v63 }
 0x182   : > { %1122 = vst.msk [vmem:[%s1701_s16 + $0x64] sm:$0xf] %vm1096_vm0, %v1356_v0 }
 0x183 PF: > { %s13_s12 = sadd.s32 1, %s1519_s12  }
 0x184   : > { %p10_p4 = scmp.ge.s32.totalorder %s13_s12, 4  }
 0x186   :  { %12 = sbr.rel (!%p10_p4) target bundleno = 1 (0x1), region = 62 }

// kernel: dqn_forward.5
= control target key start
LH: loop header
LB: loop body
LE: loop exit
PB: predicated region body
PF: predicated region fallthrough
CT: control target
= control target key end

     0   :  { %s1176_s12 = smov 0   ;;  %s1364_s0 = inlined_call_operand.vmem [shape: bf16[192,512], index: 0, kind: input, shape index: {}]   ;;  %s1365_s1 = inlined_call_operand.vmem [shape: bf16[512,64], index: 1, kind: input, shape index: {}]   ;;  %s1366_s2 = inlined_call_operand.vmem [shape: f32[1,64], index: 2, kind: input, shape index: {}]   ;;  %s1367_s3 = inlined_call_operand.vmem [shape: bf16[192,64], index: 3, kind: output, shape index: {}]  }
   0x1 LB: > { %s876_s13 = sadd.s32 4294967295, %s1154_s12   ;;  %p880_p0 = scmp.ge.s32.totalorder %s1154_s12, 1  ;;  %s1154_s12 = sphi %s1176_s12, %s13_s12  }
   0x2   : > { %p139_p1 = scmp.lt.s32.totalorder %s1154_s12, 3 }
   0x4   : > { %p140_p2 = pnand %p880_p0, %p139_p1 }
   0x5   : > { %v1080_v0 = vld [vmem:[%s1365_s1 + $0x40] sm:$0xff] (!%p140_p2)   ;;  %v1084_v4 = vld [vmem:[%s1365_s1 + $0x48] sm:$0xff] (!%p140_p2)   ;;  %v1088_v8 = vld [vmem:[%s1365_s1 + $0x50] sm:$0xff] (!%p140_p2)   ;;  %s164_s19 = smul.u32 (!%p140_p2), 12, %s876_s13  ;;  %vm807_vm0 = vcmask (!%p140_p2), 519168  }
   0x6   : > { %143 = sbr.rel (%p140_p2) target bundleno = 305 (0x131), region = 32  ;;  %v1081_v1 = vld [vmem:[%s1365_s1 + $0xc0] sm:$0xff] (!%p140_p2)   ;;  %968 = vmatprep.subr.bf16.mxu0 (!%p140_p2), %v1080_v0  ;;  %v1085_v5 = vld [vmem:[%s1365_s1 + $0xc8] sm:$0xff] (!%p140_p2)   ;;  %v1089_v9 = vld [vmem:[%s1365_s1 + $0xd0] sm:$0xff] (!%p140_p2)  }
   0x7   : > { %v1082_v2 = vld [vmem:[%s1365_s1] sm:$0xff] (!%p140_p2)   ;;  %1020 = vmatprep.subr.bf16.mxu1 (!%p140_p2), %v1081_v1  ;;  %v1086_v6 = vld [vmem:[%s1365_s1 + $0x8] sm:$0xff] (!%p140_p2)   ;;  %v1090_v10 = vld [vmem:[%s1365_s1 + $0x10] sm:$0xff] (!%p140_p2)   ;;  %p165_p3 = scmp.lt.s32.totalorder (!%p140_p2), %s164_s19, 23 }
   0x8   : > { %v1083_v3 = vld [vmem:[%s1365_s1 + $0x80] sm:$0xff] (!%p140_p2)   ;;  %969 = vmatpush3.bf16.msra.mxu0 (!%p140_p2), %v1082_v2  ;;  %v1087_v7 = vld [vmem:[%s1365_s1 + $0x88] sm:$0xff] (!%p140_p2)   ;;  %v1091_v11 = vld [vmem:[%s1365_s1 + $0x90] sm:$0xff] (!%p140_p2)  }
   0x9   : > { %1021 = vmatpush3.bf16.msra.mxu1 (!%p140_p2), %v1083_v3  ;;  %970 = vmatprep.subr.bf16.mxu0 (!%p140_p2), %v1084_v4  ;;  %v1092_v12 = vld [vmem:[%s1365_s1 + $0x58] sm:$0xff] (!%p140_p2)   ;;  %v1096_v16 = vld [vmem:[%s1365_s1 + $0x60] sm:$0xff] (!%p140_p2)   ;;  %v1100_v20 = vld [vmem:[%s1365_s1 + $0x68] sm:$0xff] (!%p140_p2)  }
   0xa   : > { %1022 = vmatprep.subr.bf16.mxu1 (!%p140_p2), %v1085_v5  ;;  %v1093_v13 = vld [vmem:[%s1365_s1 + $0xd8] sm:$0xff] (!%p140_p2)   ;;  %v1097_v17 = vld [vmem:[%s1365_s1 + $0xe0] sm:$0xff] (!%p140_p2)   ;;  %v1101_v21 = vld [vmem:[%s1365_s1 + $0xe8] sm:$0xff] (!%p140_p2)  }
   0xb   : > { %v1094_v14 = vld [vmem:[%s1365_s1 + $0x18] sm:$0xff] (!%p140_p2)   ;;  %v1098_v18 = vld [vmem:[%s1365_s1 + $0x20] sm:$0xff] (!%p140_p2)   ;;  %v1102_v22 = vld [vmem:[%s1365_s1 + $0x28] sm:$0xff] (!%p140_p2)  }
   0xc   : > { %971 = vmatpush3.bf16.msra.mxu0 (!%p140_p2), %v1086_v6  ;;  %v1095_v15 = vld [vmem:[%s1365_s1 + $0x98] sm:$0xff] (!%p140_p2)   ;;  %v1099_v19 = vld [vmem:[%s1365_s1 + $0xa0] sm:$0xff] (!%p140_p2)   ;;  %v1103_v23 = vld [vmem:[%s1365_s1 + $0xa8] sm:$0xff] (!%p140_p2)  }
   0xd   : > { %1023 = vmatpush3.bf16.msra.mxu1 %v1087_v7  ;;  %972 = vmatprep.subr.bf16.mxu0 %v1088_v8  ;;  %s1369_s19 = smov (!%p165_p3, %s164_s19), 23  ;;  %v1104_v24 = vld [vmem:[%s1365_s1 + $0x70] sm:$0xff]   ;;  %v1108_v28 = vld [vmem:[%s1365_s1 + $0x78] sm:$0xff]   ;;  %v1317_v58 = vld [vmem:[%s1366_s2] ss:$0 sm:$0xff] }
   0xe   : > { %1024 = vmatprep.subr.bf16.mxu1 %v1089_v9  ;;  %v1105_v25 = vld [vmem:[%s1365_s1 + $0xf0] sm:$0xff]   ;;  %s955_s18 = sshll.u32 %s1369_s19, 4  ;;  %v1109_v29 = vld [vmem:[%s1365_s1 + $0xf8] sm:$0xff]   ;;  %s883_s7 = sshll.u32 %s1369_s19, 2 }
   0xf   : > { %v1106_v26 = vld [vmem:[%s1365_s1 + $0x30] sm:$0xff]   ;;  %s1282_s13 = scalar_lea.vmem %s1364_s0, %s955_s18  ;;  %v1110_v30 = vld [vmem:[%s1365_s1 + $0x38] sm:$0xff]   ;;  %s1325_s10 = scalar_lea.vmem %s1367_s3, %s883_s7 }
  0x10   : > { %973 = vmatpush3.bf16.msra.mxu0 %v1090_v10  ;;  %v1107_v27 = vld [vmem:[%s1365_s1 + $0xb0] sm:$0xff]   ;;  %v1111_v31 = vld [vmem:[%s1365_s1 + $0xb8] sm:$0xff]  }
  0x11   : > { %1025 = vmatpush3.bf16.msra.mxu1 %v1091_v11  ;;  %974 = vmatprep.subr.bf16.mxu0 %v1092_v12  ;;  %v1112_v32 = vld [vmem:[%s1282_s13] ss:$16 sps:$4 sm:$0xff]   ;;  %v1114_v33 = vld [vmem:[%s1282_s13 + $0x4] ss:$16 sps:$4 sm:$0xff]   ;;  %v1115_v34 = vld [vmem:[%s1282_s13 + $0x8] ss:$16 sps:$4 sm:$0xff]  }
  0x12   : > { %1026 = vmatprep.subr.bf16.mxu1 %v1093_v13  ;;  %v1117_v35 = vld [vmem:[%s1282_s13 + $0xc] ss:$16 sps:$4 sm:$0xff]   ;;  %617 = vmatprep.mubr.bf16.mxu0 %v1114_v33  ;;  %v1118_v36 = vld [vmem:[%s1282_s13 + $0x24] ss:$16 sps:$4 sm:$0xff]   ;;  %v1122_v38 = vld [vmem:[%s1282_s13 + $0x20] ss:$16 sps:$4 sm:$0xff]  }
  0x13   : > { %698 = vmatprep.mubr.bf16.mxu1 %v1117_v35  ;;  %v1120_v37 = vld [vmem:[%s1282_s13 + $0x2c] ss:$16 sps:$4 sm:$0xff]   ;;  %v1123_v39 = vld [vmem:[%s1282_s13 + $0x28] ss:$16 sps:$4 sm:$0xff]   ;;  %v1124_v40 = vld [vmem:[%s1282_s13 + $0x44] ss:$16 sps:$4 sm:$0xff]  }
  0x14   : > { %975 = vmatpush3.bf16.msra.mxu0 %v1094_v14  ;;  %v1126_v41 = vld [vmem:[%s1282_s13 + $0x4c] ss:$16 sps:$4 sm:$0xff]   ;;  %v1128_v42 = vld [vmem:[%s1282_s13 + $0x40] ss:$16 sps:$4 sm:$0xff]   ;;  %v1129_v43 = vld [vmem:[%s1282_s13 + $0x48] ss:$16 sps:$4 sm:$0xff]  }
  0x15   : > { %1027 = vmatpush3.bf16.msra.mxu1 %v1095_v15  ;;  %976 = vmatprep.subr.bf16.mxu0 %v1096_v16  ;;  %v1130_v44 = vld [vmem:[%s1282_s13 + $0x64] ss:$16 sps:$4 sm:$0xff]   ;;  %v1132_v45 = vld [vmem:[%s1282_s13 + $0x6c] ss:$16 sps:$4 sm:$0xff]   ;;  %v1134_v46 = vld [vmem:[%s1282_s13 + $0x60] ss:$16 sps:$4 sm:$0xff]  }
  0x16   : > { %1028 = vmatprep.subr.bf16.mxu1 %v1097_v17  ;;  %v1135_v47 = vld [vmem:[%s1282_s13 + $0x68] ss:$16 sps:$4 sm:$0xff]   ;;  %v1136_v48 = vld [vmem:[%s1282_s13 + $0x84] ss:$16 sps:$4 sm:$0xff]   ;;  %v1138_v49 = vld [vmem:[%s1282_s13 + $0x8c] ss:$16 sps:$4 sm:$0xff]  }
  0x17   : > { %v1140_v50 = vld [vmem:[%s1282_s13 + $0x80] ss:$16 sps:$4 sm:$0xff]   ;;  %v1141_v51 = vld [vmem:[%s1282_s13 + $0x88] ss:$16 sps:$4 sm:$0xff]   ;;  %v1142_v52 = vld [vmem:[%s1282_s13 + $0xa4] ss:$16 sps:$4 sm:$0xff]  }
  0x18   : > { %977 = vmatpush3.bf16.msra.mxu0 %v1098_v18  ;;  %v1144_v53 = vld [vmem:[%s1282_s13 + $0xac] ss:$16 sps:$4 sm:$0xff]   ;;  %v1146_v54 = vld [vmem:[%s1282_s13 + $0xa0] ss:$16 sps:$4 sm:$0xff]   ;;  %v1147_v55 = vld [vmem:[%s1282_s13 + $0xa8] ss:$16 sps:$4 sm:$0xff]  }
  0x19   : > { %1029 = vmatpush3.bf16.msra.mxu1 %v1099_v19  ;;  %978 = vmatprep.subr.bf16.mxu0 %v1100_v20 }
  0x1a   : > { %1030 = vmatprep.subr.bf16.mxu1 %v1101_v21 }
  0x1c   : > { %979 = vmatpush3.bf16.msra.mxu0 %v1102_v22 }
  0x1d   : > { %1031 = vmatpush3.bf16.msra.mxu1 %v1103_v23  ;;  %980 = vmatprep.subr.bf16.mxu0 %v1104_v24 }
  0x1e   : > { %1032 = vmatprep.subr.bf16.mxu1 %v1105_v25 }
  0x20   : > { %981 = vmatpush3.bf16.msra.mxu0 %v1106_v26 }
  0x21   : > { %1033 = vmatpush3.bf16.msra.mxu1 %v1107_v27  ;;  %982 = vmatprep.subr.bf16.mxu0 %v1108_v28 }
  0x22   : > { %1034 = vmatprep.subr.bf16.mxu1 %v1109_v29 }
  0x24   : > { %983 = vmatpush3.bf16.msra.mxu0 %v1110_v30 }
  0x25   : > { %1035 = vmatpush3.bf16.msra.mxu1 %v1111_v31 }
  0x27   : > { %618 = vmatmul.mubr.bf16.vlgmr.msra.gmra.mrb[0].mxu0 %v1112_v32 }
  0x28   : > { %699 = vmatmul.mubr.bf16.vlgmr.msra.gmra.mrb[0].mxu1 %v1115_v34  ;;  %625 = vmatprep.mubr.bf16.mxu0 %v1118_v36 }
  0x29   : > { %706 = vmatprep.mubr.bf16.mxu1 %v1120_v37 }
  0x2f   : > { %626 = vmatmul.mubr.bf16.gmra.mrb[4].mxu0 %v1122_v38 }
  0x30   : > { %707 = vmatmul.mubr.bf16.gmra.mrb[4].mxu1 %v1123_v39  ;;  %633 = vmatprep.mubr.bf16.mxu0 %v1124_v40 }
  0x31   : > { %714 = vmatprep.mubr.bf16.mxu1 %v1126_v41 }
  0x37   : > { %634 = vmatmul.mubr.bf16.gmra.mrb[8].mxu0 %v1128_v42 }
  0x38   : > { %715 = vmatmul.mubr.bf16.gmra.mrb[8].mxu1 %v1129_v43  ;;  %641 = vmatprep.mubr.bf16.mxu0 %v1130_v44 }
  0x39   : > { %722 = vmatprep.mubr.bf16.mxu1 %v1132_v45 }
  0x3f   : > { %642 = vmatmul.mubr.bf16.gmra.mrb[12].mxu0 %v1134_v46 }
  0x40   : > { %723 = vmatmul.mubr.bf16.gmra.mrb[12].mxu1 %v1135_v47  ;;  %649 = vmatprep.mubr.bf16.mxu0 %v1136_v48 }
  0x41   : > { %730 = vmatprep.mubr.bf16.mxu1 %v1138_v49 }
  0x47   : > { %650 = vmatmul.mubr.bf16.gmra.mrb[16].mxu0 %v1140_v50 }
  0x48   : > { %731 = vmatmul.mubr.bf16.gmra.mrb[16].mxu1 %v1141_v51  ;;  %657 = vmatprep.mubr.bf16.mxu0 %v1142_v52 }
  0x49   : > { %738 = vmatprep.mubr.bf16.mxu1 %v1144_v53 }
  0x4f   : > { %658 = vmatmul.mubr.bf16.gmra.mrb[20].mxu0 %v1146_v54 }
  0x50   : > { %739 = vmatmul.mubr.bf16.gmra.mrb[20].mxu1 %v1147_v55 }
  0xfa   : > { %v984_v56 = vpop.f32.mrb[0].mxu0 }
  0xfb   : > { %v1036_v57 = vpop.f32.mrb[0].mxu1  ;;  %v985_v59 = vpop.f32.mrb[1].mxu0 }
  0xfc   : > { %v986_v60 = vadd.f32 %v985_v59, %v984_v56  ;;  %v1037_v61 = vpop.f32.mrb[1].mxu1  ;;  %v987_v62 = vpop.f32.mrb[2].mxu0 }
  0xfd   : > { %v1038_v63 = vadd.f32 %v1037_v61, %v1036_v57  ;;  %v1039_v0 = vpop.f32.mrb[2].mxu1  ;;  %v988_v1 = vpop.f32.mrb[3].mxu0 }
  0xfe   : > { %v620_v2 = vadd.f32 %v986_v60, %v1317_v58  ;;  %v989_v3 = vadd.f32 %v988_v1, %v987_v62  ;;  %v1040_v4 = vpop.f32.mrb[3].mxu1 }
  0xff   : > { %v1041_v5 = vadd.f32 %v1040_v4, %v1039_v0 }
 0x100   : > { %v701_v6 = vadd.f32 %v1038_v63, %v620_v2  ;;  %v623_v7 = vadd.f32 %v989_v3, %v1317_v58 }
 0x102   : > { %v747_v8 = vmax.f32 %v701_v6, 0.0  ;;  %v704_v9 = vadd.f32 %v1041_v5, %v623_v7  ;;  %v990_v10 = vpop.f32.mrb[4].mxu0 }
 0x103   : > { %v1042_v11 = vpop.f32.mrb[4].mxu1  ;;  %v991_v12 = vpop.f32.mrb[5].mxu0 }
 0x104   : > { %v956_v13 = vpack.c.bf16 %v747_v8, %v747_v8  ;;  %v748_v14 = vmax.f32 %v704_v9, 0.0  ;;  %v992_v15 = vadd.f32 %v991_v12, %v990_v10  ;;  %v1043_v16 = vpop.f32.mrb[5].mxu1  ;;  %v993_v17 = vpop.f32.mrb[6].mxu0 }
 0x105   : > { %v1044_v18 = vadd.f32 %v1043_v16, %v1042_v11  ;;  %v1045_v19 = vpop.f32.mrb[6].mxu1  ;;  %v994_v20 = vpop.f32.mrb[7].mxu0 }
 0x106   : > { %808 = vst.msk [vmem:[%s1325_s10] sm:$0xf] %vm807_vm0, %v956_v13  ;;  %v957_v21 = vpack.c.bf16 %v748_v14, %v748_v14  ;;  %v628_v22 = vadd.f32 %v992_v15, %v1317_v58  ;;  %v995_v23 = vadd.f32 %v994_v20, %v993_v17  ;;  %v1046_v24 = vpop.f32.mrb[7].mxu1 }
 0x107   : > { %v1047_v25 = vadd.f32 %v1046_v24, %v1045_v19 }
 0x108   : > { %809 = vst.msk [vmem:[%s1325_s10 + $0x4] sm:$0xf] %vm807_vm0, %v957_v21  ;;  %v709_v26 = vadd.f32 %v1044_v18, %v628_v22  ;;  %v631_v27 = vadd.f32 %v995_v23, %v1317_v58 }
 0x10a   : > { %v749_v28 = vmax.f32 %v709_v26, 0.0  ;;  %v712_v29 = vadd.f32 %v1047_v25, %v631_v27  ;;  %v996_v30 = vpop.f32.mrb[8].mxu0 }
 0x10b   : > { %v1048_v31 = vpop.f32.mrb[8].mxu1  ;;  %v997_v32 = vpop.f32.mrb[9].mxu0 }
 0x10c   : > { %v958_v33 = vpack.c.bf16 %v749_v28, %v749_v28  ;;  %v750_v34 = vmax.f32 %v712_v29, 0.0  ;;  %v998_v35 = vadd.f32 %v997_v32, %v996_v30  ;;  %v1049_v36 = vpop.f32.mrb[9].mxu1  ;;  %v999_v37 = vpop.f32.mrb[10].mxu0 }
 0x10d   : > { %v1050_v38 = vadd.f32 %v1049_v36, %v1048_v31  ;;  %v1051_v39 = vpop.f32.mrb[10].mxu1  ;;  %v1000_v40 = vpop.f32.mrb[11].mxu0 }
 0x10e   : > { %810 = vst.msk [vmem:[%s1325_s10 + $0x8] sm:$0xf] %vm807_vm0, %v958_v33  ;;  %v959_v41 = vpack.c.bf16 %v750_v34, %v750_v34  ;;  %v636_v42 = vadd.f32 %v998_v35, %v1317_v58  ;;  %v1001_v43 = vadd.f32 %v1000_v40, %v999_v37  ;;  %v1052_v44 = vpop.f32.mrb[11].mxu1 }
 0x10f   : > { %v1053_v45 = vadd.f32 %v1052_v44, %v1051_v39 }
 0x110   : > { %811 = vst.msk [vmem:[%s1325_s10 + $0xc] sm:$0xf] %vm807_vm0, %v959_v41  ;;  %v717_v46 = vadd.f32 %v1050_v38, %v636_v42  ;;  %v639_v47 = vadd.f32 %v1001_v43, %v1317_v58 }
 0x112   : > { %v751_v48 = vmax.f32 %v717_v46, 0.0  ;;  %v720_v49 = vadd.f32 %v1053_v45, %v639_v47  ;;  %v1002_v50 = vpop.f32.mrb[12].mxu0 }
 0x113   : > { %v1054_v51 = vpop.f32.mrb[12].mxu1  ;;  %v1003_v52 = vpop.f32.mrb[13].mxu0 }
 0x114   : > { %v960_v53 = vpack.c.bf16 %v751_v48, %v751_v48  ;;  %v752_v54 = vmax.f32 %v720_v49, 0.0  ;;  %v1004_v55 = vadd.f32 %v1003_v52, %v1002_v50  ;;  %v1055_v56 = vpop.f32.mrb[13].mxu1  ;;  %v1005_v57 = vpop.f32.mrb[14].mxu0 }
 0x115   : > { %v1056_v59 = vadd.f32 %v1055_v56, %v1054_v51  ;;  %v1057_v60 = vpop.f32.mrb[14].mxu1  ;;  %v1006_v61 = vpop.f32.mrb[15].mxu0 }
 0x116   : > { %812 = vst.msk [vmem:[%s1325_s10 + $0x10] sm:$0xf] %vm807_vm0, %v960_v53  ;;  %v961_v62 = vpack.c.bf16 %v752_v54, %v752_v54  ;;  %v644_v63 = vadd.f32 %v1004_v55, %v1317_v58  ;;  %v1007_v0 = vadd.f32 %v1006_v61, %v1005_v57  ;;  %v1058_v1 = vpop.f32.mrb[15].mxu1 }
 0x117   : > { %v1059_v2 = vadd.f32 %v1058_v1, %v1057_v60 }
 0x118   : > { %813 = vst.msk [vmem:[%s1325_s10 + $0x14] sm:$0xf] %vm807_vm0, %v961_v62  ;;  %v725_v3 = vadd.f32 %v1056_v59, %v644_v63  ;;  %v647_v4 = vadd.f32 %v1007_v0, %v1317_v58 }
 0x11a   : > { %v753_v5 = vmax.f32 %v725_v3, 0.0  ;;  %v728_v6 = vadd.f32 %v1059_v2, %v647_v4  ;;  %v1008_v7 = vpop.f32.mrb[16].mxu0 }
 0x11b   : > { %v1060_v8 = vpop.f32.mrb[16].mxu1  ;;  %v1009_v9 = vpop.f32.mrb[17].mxu0 }
 0x11c   : > { %v962_v10 = vpack.c.bf16 %v753_v5, %v753_v5  ;;  %v754_v11 = vmax.f32 %v728_v6, 0.0  ;;  %v1010_v12 = vadd.f32 %v1009_v9, %v1008_v7  ;;  %v1061_v13 = vpop.f32.mrb[17].mxu1  ;;  %v1011_v14 = vpop.f32.mrb[18].mxu0 }
 0x11d   : > { %v1062_v15 = vadd.f32 %v1061_v13, %v1060_v8  ;;  %v1063_v16 = vpop.f32.mrb[18].mxu1  ;;  %v1012_v17 = vpop.f32.mrb[19].mxu0 }
 0x11e   : > { %814 = vst.msk [vmem:[%s1325_s10 + $0x18] sm:$0xf] %vm807_vm0, %v962_v10  ;;  %v963_v18 = vpack.c.bf16 %v754_v11, %v754_v11  ;;  %v652_v19 = vadd.f32 %v1010_v12, %v1317_v58  ;;  %v1013_v20 = vadd.f32 %v1012_v17, %v1011_v14  ;;  %v1064_v21 = vpop.f32.mrb[19].mxu1 }
 0x11f   : > { %v1065_v22 = vadd.f32 %v1064_v21, %v1063_v16 }
 0x120   : > { %815 = vst.msk [vmem:[%s1325_s10 + $0x1c] sm:$0xf] %vm807_vm0, %v963_v18  ;;  %v733_v23 = vadd.f32 %v1062_v15, %v652_v19  ;;  %v655_v24 = vadd.f32 %v1013_v20, %v1317_v58 }
 0x122   : > { %v755_v25 = vmax.f32 %v733_v23, 0.0  ;;  %v736_v26 = vadd.f32 %v1065_v22, %v655_v24  ;;  %v1014_v27 = vpop.f32.mrb[20].mxu0 }
 0x123   : > { %v1066_v28 = vpop.f32.mrb[20].mxu1  ;;  %v1015_v29 = vpop.f32.mrb[21].mxu0 }
 0x124   : > { %v964_v30 = vpack.c.bf16 %v755_v25, %v755_v25  ;;  %v756_v31 = vmax.f32 %v736_v26, 0.0  ;;  %v1016_v32 = vadd.f32 %v1015_v29, %v1014_v27  ;;  %v1067_v33 = vpop.f32.mrb[21].mxu1  ;;  %v1017_v34 = vpop.f32.mrb[22].mxu0 }
 0x125   : > { %v1068_v35 = vadd.f32 %v1067_v33, %v1066_v28  ;;  %v1069_v36 = vpop.f32.mrb[22].mxu1  ;;  %v1018_v37 = vpop.f32.mrb[23].mxu0 }
 0x126   : > { %816 = vst.msk [vmem:[%s1325_s10 + $0x20] sm:$0xf] %vm807_vm0, %v964_v30  ;;  %v965_v38 = vpack.c.bf16 %v756_v31, %v756_v31  ;;  %v660_v39 = vadd.f32 %v1016_v32, %v1317_v58  ;;  %v1019_v40 = vadd.f32 %v1018_v37, %v1017_v34  ;;  %v1070_v41 = vpop.f32.mrb[23].mxu1 }
 0x127   : > { %v1071_v42 = vadd.f32 %v1070_v41, %v1069_v36 }
 0x128   : > { %817 = vst.msk [vmem:[%s1325_s10 + $0x24] sm:$0xf] %vm807_vm0, %v965_v38  ;;  %v741_v43 = vadd.f32 %v1068_v35, %v660_v39  ;;  %v663_v44 = vadd.f32 %v1019_v40, %v1317_v58 }
 0x12a   : > { %v757_v45 = vmax.f32 %v741_v43, 0.0  ;;  %v744_v46 = vadd.f32 %v1071_v42, %v663_v44 }
 0x12c   : > { %v966_v47 = vpack.c.bf16 %v757_v45, %v757_v45  ;;  %v758_v48 = vmax.f32 %v744_v46, 0.0 }
 0x12e   : > { %818 = vst.msk [vmem:[%s1325_s10 + $0x28] sm:$0xf] %vm807_vm0, %v966_v47  ;;  %v967_v49 = vpack.c.bf16 %v758_v48, %v758_v48 }
 0x130   : > { %819 = vst.msk [vmem:[%s1325_s10 + $0x2c] sm:$0xf] %vm807_vm0, %v967_v49 }
 0x131 PF: > { %s13_s12 = sadd.s32 1, %s1154_s12  }
 0x132   : > { %p10_p4 = scmp.ge.s32.totalorder %s13_s12, 4  }
 0x134   :  { %12 = sbr.rel (!%p10_p4) target bundleno = 1 (0x1), region = 62 }

// kernel: dqn_forward.6
= control target key start
LH: loop header
LB: loop body
LE: loop exit
PB: predicated region body
PF: predicated region fallthrough
CT: control target
= control target key end

     0   :  { %s1258_s12 = smov 0   ;;  %s1437_s0 = inlined_call_operand.vmem [shape: bf16[128,640], index: 0, kind: input, shape index: {}]   ;;  %s1438_s1 = inlined_call_operand.vmem [shape: bf16[640,64], index: 1, kind: input, shape index: {}]   ;;  %s1439_s2 = inlined_call_operand.vmem [shape: f32[1,64], index: 2, kind: input, shape index: {}]   ;;  %s1440_s3 = inlined_call_operand.vmem [shape: bf16[128,64], index: 3, kind: output, shape index: {}]  }
   0x1 LB: > { %s933_s13 = sadd.s32 4294967295, %s1236_s12   ;;  %p937_p0 = scmp.ge.s32.totalorder %s1236_s12, 1  ;;  %s1236_s12 = sphi %s1258_s12, %s13_s12  }
   0x2   : > { %p139_p1 = scmp.lt.s32.totalorder %s1236_s12, 3 }
   0x4   : > { %p140_p2 = pnand %p937_p0, %p139_p1 }
   0x5   : > { %v1162_v0 = vld [vmem:[%s1438_s1 + $0x40] sm:$0xff] (!%p140_p2)   ;;  %v1166_v4 = vld [vmem:[%s1438_s1 + $0x48] sm:$0xff] (!%p140_p2)   ;;  %v1170_v8 = vld [vmem:[%s1438_s1 + $0x50] sm:$0xff] (!%p140_p2)   ;;  %s938_s19 = sshll.u32 (!%p140_p2), %s933_s13, 3  ;;  %vm868_vm0 = vcmask (!%p140_p2), 519168  }
   0x6   : > { %143 = sbr.rel (%p140_p2) target bundleno = 295 (0x127), region = 32  ;;  %v1163_v1 = vld [vmem:[%s1438_s1 + $0xc0] sm:$0xff] (!%p140_p2)   ;;  %1021 = vmatprep.subr.bf16.mxu0 (!%p140_p2), %v1162_v0  ;;  %v1167_v5 = vld [vmem:[%s1438_s1 + $0xc8] sm:$0xff] (!%p140_p2)   ;;  %v1171_v9 = vld [vmem:[%s1438_s1 + $0xd0] sm:$0xff] (!%p140_p2)   ;;  %p165_p3 = scmp.lt.s32.totalorder (!%p140_p2), %s938_s19, 15 }
   0x7   : > { %v1164_v2 = vld [vmem:[%s1438_s1] sm:$0xff] (!%p140_p2)   ;;  %1061 = vmatprep.subr.bf16.mxu1 (!%p140_p2), %v1163_v1  ;;  %v1168_v6 = vld [vmem:[%s1438_s1 + $0x8] sm:$0xff] (!%p140_p2)   ;;  %v1172_v10 = vld [vmem:[%s1438_s1 + $0x10] sm:$0xff] (!%p140_p2)  }
   0x8   : > { %v1165_v3 = vld [vmem:[%s1438_s1 + $0x80] sm:$0xff] (!%p140_p2)   ;;  %1022 = vmatpush3.bf16.msra.mxu0 (!%p140_p2), %v1164_v2  ;;  %v1169_v7 = vld [vmem:[%s1438_s1 + $0x88] sm:$0xff] (!%p140_p2)   ;;  %v1173_v11 = vld [vmem:[%s1438_s1 + $0x90] sm:$0xff] (!%p140_p2)  }
   0x9   : > { %1062 = vmatpush3.bf16.msra.mxu1 (!%p140_p2), %v1165_v3  ;;  %1023 = vmatprep.subr.bf16.mxu0 (!%p140_p2), %v1166_v4  ;;  %v1174_v12 = vld [vmem:[%s1438_s1 + $0x58] sm:$0xff] (!%p140_p2)   ;;  %v1178_v16 = vld [vmem:[%s1438_s1 + $0x60] sm:$0xff] (!%p140_p2)   ;;  %v1182_v20 = vld [vmem:[%s1438_s1 + $0x68] sm:$0xff] (!%p140_p2)  }
   0xa   : > { %1063 = vmatprep.subr.bf16.mxu1 (!%p140_p2), %v1167_v5  ;;  %v1175_v13 = vld [vmem:[%s1438_s1 + $0xd8] sm:$0xff] (!%p140_p2)   ;;  %v1179_v17 = vld [vmem:[%s1438_s1 + $0xe0] sm:$0xff] (!%p140_p2)   ;;  %v1183_v21 = vld [vmem:[%s1438_s1 + $0xe8] sm:$0xff] (!%p140_p2)  }
   0xb   : > { %v1176_v14 = vld [vmem:[%s1438_s1 + $0x18] sm:$0xff] (!%p140_p2)   ;;  %v1180_v18 = vld [vmem:[%s1438_s1 + $0x20] sm:$0xff] (!%p140_p2)   ;;  %v1184_v22 = vld [vmem:[%s1438_s1 + $0x28] sm:$0xff] (!%p140_p2)  }
   0xc   : > { %1024 = vmatpush3.bf16.msra.mxu0 (!%p140_p2), %v1168_v6  ;;  %v1177_v15 = vld [vmem:[%s1438_s1 + $0x98] sm:$0xff] (!%p140_p2)   ;;  %v1181_v19 = vld [vmem:[%s1438_s1 + $0xa0] sm:$0xff] (!%p140_p2)   ;;  %v1185_v23 = vld [vmem:[%s1438_s1 + $0xa8] sm:$0xff] (!%p140_p2)  }
   0xd   : > { %1064 = vmatpush3.bf16.msra.mxu1 %v1169_v7  ;;  %1025 = vmatprep.subr.bf16.mxu0 %v1170_v8  ;;  %s1442_s19 = smov (!%p165_p3, %s938_s19), 15  ;;  %v1186_v24 = vld [vmem:[%s1438_s1 + $0x70] sm:$0xff]   ;;  %v1190_v28 = vld [vmem:[%s1438_s1 + $0x78] sm:$0xff]   ;;  %v1200_v36 = vld [vmem:[%s1438_s1 + $0x100] sm:$0xff]  }
   0xe   : > { %1065 = vmatprep.subr.bf16.mxu1 %v1171_v9  ;;  %v1187_v25 = vld [vmem:[%s1438_s1 + $0xf0] sm:$0xff]   ;;  %s1153_s16 = smul.u32 20, %s1442_s19  ;;  %v1191_v29 = vld [vmem:[%s1438_s1 + $0xf8] sm:$0xff]   ;;  %v1201_v37 = vld [vmem:[%s1438_s1 + $0x108] sm:$0xff]   ;;  %s941_s26 = sshll.u32 %s1442_s19, 2 }
   0xf   : > { %v1188_v26 = vld [vmem:[%s1438_s1 + $0x30] sm:$0xff]   ;;  %v1192_v30 = vld [vmem:[%s1438_s1 + $0x38] sm:$0xff]   ;;  %v1216_v46 = vld [vmem:[%s1438_s1 + $0x120] sm:$0xff]   ;;  %s175_s28 = scalar_lea.vmem %s1440_s3, %s941_s26 }
  0x10   : > { %1026 = vmatpush3.bf16.msra.mxu0 %v1172_v10  ;;  %v1189_v27 = vld [vmem:[%s1438_s1 + $0xb0] sm:$0xff]   ;;  %s1364_s13 = scalar_lea.vmem %s1437_s0, %s1153_s16  ;;  %v1193_v31 = vld [vmem:[%s1438_s1 + $0xb8] sm:$0xff]   ;;  %v1217_v51 = vld [vmem:[%s1438_s1 + $0x128] sm:$0xff]  }
  0x11   : > { %1066 = vmatpush3.bf16.msra.mxu1 %v1173_v11  ;;  %1027 = vmatprep.subr.bf16.mxu0 %v1174_v12  ;;  %v1194_v32 = vld [vmem:[%s1364_s13] ss:$20 sps:$4 sm:$0xff]   ;;  %v1196_v33 = vld [vmem:[%s1364_s13 + $0x4] ss:$20 sps:$4 sm:$0xff]   ;;  %v1197_v34 = vld [vmem:[%s1364_s13 + $0x8] ss:$20 sps:$4 sm:$0xff]  }
  0x12   : > { %1067 = vmatprep.subr.bf16.mxu1 %v1175_v13  ;;  %v1199_v35 = vld [vmem:[%s1364_s13 + $0xc] ss:$20 sps:$4 sm:$0xff]   ;;  %665 = vmatprep.mubr.bf16.mxu0 %v1196_v33  ;;  %v1204_v39 = vld [vmem:[%s1364_s13 + $0x34] ss:$20 sps:$4 sm:$0xff]   ;;  %v1207_v42 = vld [vmem:[%s1364_s13 + $0x30] ss:$20 sps:$4 sm:$0xff]  }
  0x13   : > { %730 = vmatprep.mubr.bf16.mxu1 %v1199_v35  ;;  %v1202_v38 = vld [vmem:[%s1364_s13 + $0x2c] ss:$20 sps:$4 sm:$0xff]   ;;  %v1206_v40 = vld [vmem:[%s1364_s13 + $0x28] ss:$20 sps:$4 sm:$0xff]   ;;  %v1208_v41 = vld [vmem:[%s1438_s1 + $0x110] sm:$0xff]  }
  0x14   : > { %1028 = vmatpush3.bf16.msra.mxu0 %v1176_v14  ;;  %v1210_v43 = vld [vmem:[%s1364_s13 + $0x54] ss:$20 sps:$4 sm:$0xff]   ;;  %v1209_v44 = vld [vmem:[%s1438_s1 + $0x118] sm:$0xff]   ;;  %v1214_v47 = vld [vmem:[%s1364_s13 + $0x50] ss:$20 sps:$4 sm:$0xff]  }
  0x15   : > { %1068 = vmatpush3.bf16.msra.mxu1 %v1177_v15  ;;  %1029 = vmatprep.subr.bf16.mxu0 %v1178_v16  ;;  %v1212_v45 = vld [vmem:[%s1364_s13 + $0x5c] ss:$20 sps:$4 sm:$0xff]   ;;  %v1215_v48 = vld [vmem:[%s1364_s13 + $0x58] ss:$20 sps:$4 sm:$0xff]   ;;  %v1223_v54 = vld [vmem:[%s1364_s13 + $0x80] ss:$20 sps:$4 sm:$0xff]  }
  0x16   : > { %1069 = vmatprep.subr.bf16.mxu1 %v1179_v17  ;;  %v1218_v49 = vld [vmem:[%s1364_s13 + $0x7c] ss:$20 sps:$4 sm:$0xff]   ;;  %v1220_v50 = vld [vmem:[%s1364_s13 + $0x84] ss:$20 sps:$4 sm:$0xff]   ;;  %v1227_v56 = vld [vmem:[%s1364_s13 + $0x60] ss:$20 sps:$4 sm:$0xff]  }
  0x17   : > { %v1224_v52 = vld [vmem:[%s1438_s1 + $0x130] sm:$0xff]   ;;  %v1222_v53 = vld [vmem:[%s1364_s13 + $0x78] ss:$20 sps:$4 sm:$0xff]   ;;  %v1229_v59 = vld [vmem:[%s1364_s13 + $0x88] ss:$20 sps:$4 sm:$0xff]  }
  0x18   : > { %1030 = vmatpush3.bf16.msra.mxu0 %v1180_v18  ;;  %v1226_v55 = vld [vmem:[%s1364_s13 + $0x10] ss:$20 sps:$4 sm:$0xff]   ;;  %v1225_v57 = vld [vmem:[%s1438_s1 + $0x138] sm:$0xff]   ;;  %v942_v62 = vld [vmem:[%s1439_s2] ss:$0 sm:$0xff] }
  0x19   : > { %1070 = vmatpush3.bf16.msra.mxu1 %v1181_v19  ;;  %1031 = vmatprep.subr.bf16.mxu0 %v1182_v20  ;;  %v1228_v58 = vld [vmem:[%s1364_s13 + $0x38] ss:$20 sps:$4 sm:$0xff]  }
  0x1a   : > { %1071 = vmatprep.subr.bf16.mxu1 %v1183_v21 }
  0x1c   : > { %1032 = vmatpush3.bf16.msra.mxu0 %v1184_v22 }
  0x1d   : > { %1072 = vmatpush3.bf16.msra.mxu1 %v1185_v23  ;;  %1033 = vmatprep.subr.bf16.mxu0 %v1186_v24 }
  0x1e   : > { %1073 = vmatprep.subr.bf16.mxu1 %v1187_v25 }
  0x20   : > { %1034 = vmatpush3.bf16.msra.mxu0 %v1188_v26 }
  0x21   : > { %1074 = vmatpush3.bf16.msra.mxu1 %v1189_v27  ;;  %1035 = vmatprep.subr.bf16.mxu0 %v1190_v28 }
  0x22   : > { %1075 = vmatprep.subr.bf16.mxu1 %v1191_v29 }
  0x24   : > { %1036 = vmatpush3.bf16.msra.mxu0 %v1192_v30 }
  0x25   : > { %1076 = vmatpush3.bf16.msra.mxu1 %v1193_v31  ;;  %1113 = vmatprep.subr.bf16.mxu0 %v1200_v36 }
  0x26   : > { %1137 = vmatprep.subr.bf16.mxu1 %v1200_v36 }
  0x27   : > { %666 = vmatmul.mubr.bf16.vlgmr.msra.gmra.mrb[0].mxu0 %v1194_v32 }
  0x28   : > { %731 = vmatmul.mubr.bf16.vlgmr.msra.gmra.mrb[0].mxu1 %v1197_v34  ;;  %1114 = vmatpush3.bf16.msra.mxu0 %v1200_v36 }
  0x29   : > { %1145 = vmatpush3.bf16.msra.mxu1 %v1200_v36  ;;  %1115 = vmatprep.subr.bf16.mxu0 %v1201_v37 }
  0x2a   : > { %1138 = vmatprep.subr.bf16.mxu1 %v1201_v37  ;;  %673 = vmatprep.mubr.bf16.mxu0 %v1202_v38 }
  0x2b   : > { %738 = vmatprep.mubr.bf16.mxu1 %v1204_v39 }
  0x2c   : > { %1116 = vmatpush3.bf16.msra.mxu0 %v1201_v37 }
  0x2d   : > { %1146 = vmatpush3.bf16.msra.mxu1 %v1201_v37  ;;  %1117 = vmatprep.subr.bf16.mxu0 %v1208_v41 }
  0x2e   : > { %1139 = vmatprep.subr.bf16.mxu1 %v1208_v41 }
  0x2f   : > { %674 = vmatmul.mubr.bf16.gmra.mrb[4].mxu0 %v1206_v40 }
  0x30   : > { %739 = vmatmul.mubr.bf16.gmra.mrb[4].mxu1 %v1207_v42  ;;  %681 = vmatprep.mubr.bf16.mxu0 %v1210_v43 }
  0x31   : > { %1118 = vmatpush3.bf16.msra.mxu0 %v1208_v41  ;;  %746 = vmatprep.mubr.bf16.mxu1 %v1212_v45 }
  0x32   : > { %1147 = vmatpush3.bf16.msra.mxu1 %v1208_v41  ;;  %1119 = vmatprep.subr.bf16.mxu0 %v1209_v44 }
  0x33   : > { %1140 = vmatprep.subr.bf16.mxu1 %v1209_v44 }
  0x35   : > { %1120 = vmatpush3.bf16.msra.mxu0 %v1209_v44 }
  0x36   : > { %1148 = vmatpush3.bf16.msra.mxu1 %v1209_v44  ;;  %1121 = vmatprep.subr.bf16.mxu0 %v1216_v46 }
  0x37   : > { %682 = vmatmul.mubr.bf16.gmra.mrb[8].mxu0 %v1214_v47  ;;  %1141 = vmatprep.subr.bf16.mxu1 %v1216_v46 }
  0x38   : > { %747 = vmatmul.mubr.bf16.gmra.mrb[8].mxu1 %v1215_v48  ;;  %689 = vmatprep.mubr.bf16.mxu0 %v1218_v49 }
  0x39   : > { %1122 = vmatpush3.bf16.msra.mxu0 %v1216_v46  ;;  %754 = vmatprep.mubr.bf16.mxu1 %v1220_v50 }
  0x3a   : > { %1149 = vmatpush3.bf16.msra.mxu1 %v1216_v46  ;;  %1123 = vmatprep.subr.bf16.mxu0 %v1217_v51 }
  0x3b   : > { %1142 = vmatprep.subr.bf16.mxu1 %v1217_v51 }
  0x3d   : > { %1124 = vmatpush3.bf16.msra.mxu0 %v1217_v51 }
  0x3e   : > { %1150 = vmatpush3.bf16.msra.mxu1 %v1217_v51  ;;  %1125 = vmatprep.subr.bf16.mxu0 %v1224_v52 }
  0x3f   : > { %690 = vmatmul.mubr.bf16.gmra.mrb[12].mxu0 %v1222_v53  ;;  %1143 = vmatprep.subr.bf16.mxu1 %v1224_v52 }
  0x40   : > { %755 = vmatmul.mubr.bf16.gmra.mrb[12].mxu1 %v1223_v54  ;;  %1129 = vmatprep.mubr.bf16.mxu0 %v1226_v55 }
  0x41   : > { %1126 = vmatpush3.bf16.msra.mxu0 %v1224_v52  ;;  %1133 = vmatprep.mubr.bf16.mxu1 %v1227_v56 }
  0x42   : > { %1151 = vmatpush3.bf16.msra.mxu1 %v1224_v52  ;;  %1127 = vmatprep.subr.bf16.mxu0 %v1225_v57 }
  0x43   : > { %1144 = vmatprep.subr.bf16.mxu1 %v1225_v57 }
  0x45   : > { %1128 = vmatpush3.bf16.msra.mxu0 %v1225_v57 }
  0x46   : > { %1152 = vmatpush3.bf16.msra.mxu1 %v1225_v57 }
  0x48   : > { %1130 = vmatmul.mubr.bf16.vlgmr.msra.gmra.mrb[16].mxu0 %v1228_v58 }
  0x49   : > { %1134 = vmatmul.mubr.bf16.vlgmr.msra.gmra.mrb[16].mxu1 %v1229_v59 }
  0xfa   : > { %v1037_v60 = vpop.f32.mrb[0].mxu0 }
  0xfb   : > { %v1077_v61 = vpop.f32.mrb[0].mxu1  ;;  %v1038_v63 = vpop.f32.mrb[1].mxu0 }
  0xfc   : > { %v1039_v0 = vadd.f32 %v1038_v63, %v1037_v60  ;;  %v1078_v1 = vpop.f32.mrb[1].mxu1  ;;  %v1040_v2 = vpop.f32.mrb[2].mxu0 }
  0xfd   : > { %v1079_v3 = vadd.f32 %v1078_v1, %v1077_v61  ;;  %v1080_v4 = vpop.f32.mrb[2].mxu1  ;;  %v1041_v5 = vpop.f32.mrb[3].mxu0 }
  0xfe   : > { %v668_v6 = vadd.f32 %v1039_v0, %v942_v62  ;;  %v1042_v7 = vadd.f32 %v1041_v5, %v1040_v2  ;;  %v1081_v8 = vpop.f32.mrb[3].mxu1 }
  0xff   : > { %v1082_v9 = vadd.f32 %v1081_v8, %v1080_v4 }
 0x100   : > { %v671_v10 = vadd.f32 %v1042_v7, %v942_v62  ;;  %v733_v11 = vadd.f32 %v1079_v3, %v668_v6 }
 0x102   : > { %v1043_v12 = vpop.f32.mrb[4].mxu0  ;;  %v1419_v13 = vadd.f32 %v1082_v9, %v671_v10 }
 0x103   : > { %v1083_v14 = vpop.f32.mrb[4].mxu1  ;;  %v1044_v15 = vpop.f32.mrb[5].mxu0 }
 0x104   : > { %v1045_v16 = vadd.f32 %v1044_v15, %v1043_v12  ;;  %v1084_v17 = vpop.f32.mrb[5].mxu1  ;;  %v1046_v18 = vpop.f32.mrb[6].mxu0 }
 0x105   : > { %v1085_v19 = vadd.f32 %v1084_v17, %v1083_v14  ;;  %v1086_v20 = vpop.f32.mrb[6].mxu1  ;;  %v1047_v21 = vpop.f32.mrb[7].mxu0 }
 0x106   : > { %v676_v22 = vadd.f32 %v1045_v16, %v942_v62  ;;  %v1048_v23 = vadd.f32 %v1047_v21, %v1046_v18  ;;  %v1087_v24 = vpop.f32.mrb[7].mxu1 }
 0x107   : > { %v1088_v25 = vadd.f32 %v1087_v24, %v1086_v20 }
 0x108   : > { %v679_v26 = vadd.f32 %v1048_v23, %v942_v62  ;;  %v741_v27 = vadd.f32 %v1085_v19, %v676_v22 }
 0x10a   : > { %v1049_v28 = vpop.f32.mrb[8].mxu0  ;;  %v744_v29 = vadd.f32 %v1088_v25, %v679_v26 }
 0x10b   : > { %v1089_v30 = vpop.f32.mrb[8].mxu1  ;;  %v1050_v31 = vpop.f32.mrb[9].mxu0 }
 0x10c   : > { %v1051_v32 = vadd.f32 %v1050_v31, %v1049_v28  ;;  %v1090_v33 = vpop.f32.mrb[9].mxu1  ;;  %v1052_v34 = vpop.f32.mrb[10].mxu0 }
 0x10d   : > { %v1091_v35 = vadd.f32 %v1090_v33, %v1089_v30  ;;  %v1092_v36 = vpop.f32.mrb[10].mxu1  ;;  %v1053_v37 = vpop.f32.mrb[11].mxu0 }
 0x10e   : > { %v684_v38 = vadd.f32 %v1051_v32, %v942_v62  ;;  %v1054_v39 = vadd.f32 %v1053_v37, %v1052_v34  ;;  %v1093_v40 = vpop.f32.mrb[11].mxu1 }
 0x10f   : > { %v1094_v41 = vadd.f32 %v1093_v40, %v1092_v36 }
 0x110   : > { %v687_v42 = vadd.f32 %v1054_v39, %v942_v62  ;;  %v749_v43 = vadd.f32 %v1091_v35, %v684_v38 }
 0x112   : > { %v1055_v44 = vpop.f32.mrb[12].mxu0  ;;  %v752_v45 = vadd.f32 %v1094_v41, %v687_v42 }
 0x113   : > { %v1095_v46 = vpop.f32.mrb[12].mxu1  ;;  %v1056_v47 = vpop.f32.mrb[13].mxu0 }
 0x114   : > { %v1057_v48 = vadd.f32 %v1056_v47, %v1055_v44  ;;  %v1096_v49 = vpop.f32.mrb[13].mxu1  ;;  %v1058_v50 = vpop.f32.mrb[14].mxu0 }
 0x115   : > { %v1097_v51 = vadd.f32 %v1096_v49, %v1095_v46  ;;  %v1098_v52 = vpop.f32.mrb[14].mxu1  ;;  %v1059_v53 = vpop.f32.mrb[15].mxu0 }
 0x116   : > { %v692_v54 = vadd.f32 %v1057_v48, %v942_v62  ;;  %v1060_v55 = vadd.f32 %v1059_v53, %v1058_v50  ;;  %v1099_v56 = vpop.f32.mrb[15].mxu1 }
 0x117   : > { %v1100_v57 = vadd.f32 %v1099_v56, %v1098_v52 }
 0x118   : > { %v695_v58 = vadd.f32 %v1060_v55, %v942_v62  ;;  %v757_v59 = vadd.f32 %v1097_v51, %v692_v54 }
 0x11a   : > { %v760_v60 = vadd.f32 %v1100_v57, %v695_v58 }
 0x11b   : > { %v1131_v61 = vpop.f32.mrb[16].mxu0 }
 0x11c   : > { %v806_v63 = vadd.f32 %v1131_v61, %v741_v27  ;;  %v1135_v0 = vpop.f32.mrb[16].mxu1  ;;  %v797_v1 = vpop.f32.mrb[17].mxu0 }
 0x11d   : > { %v822_v2 = vadd.f32 %v1135_v0, %v757_v59  ;;  %v798_v3 = vadd.f32 %v797_v1, %v733_v11  ;;  %v813_v4 = vpop.f32.mrb[17].mxu1  ;;  %v1132_v5 = vpop.f32.mrb[18].mxu0 }
 0x11e   : > { %v830_v6 = vmax.f32 %v806_v63, 0.0  ;;  %v814_v7 = vadd.f32 %v813_v4, %v749_v43  ;;  %v809_v8 = vadd.f32 %v1132_v5, %v744_v29  ;;  %v1136_v9 = vpop.f32.mrb[18].mxu1  ;;  %v800_v10 = vpop.f32.mrb[19].mxu0 }
 0x11f   : > { %v834_v62 = vmax.f32 %v822_v2, 0.0  ;;  %v828_v12 = vmax.f32 %v798_v3, 0.0  ;;  %v825_v14 = vadd.f32 %v1136_v9, %v760_v60  ;;  %v801_v15 = vadd.f32 %v800_v10, %v1419_v13  ;;  %v816_v16 = vpop.f32.mrb[19].mxu1 }
 0x120   : > { %v1015_v17 = vpack.c.bf16 %v830_v6, %v830_v6  ;;  %v832_v11 = vmax.f32 %v814_v7, 0.0  ;;  %v831_v18 = vmax.f32 %v809_v8, 0.0  ;;  %v817_v19 = vadd.f32 %v816_v16, %v752_v45 }
 0x121   : > { %v1019_v20 = vpack.c.bf16 %v834_v62, %v834_v62  ;;  %v1013_v21 = vpack.c.bf16 %v828_v12, %v828_v12  ;;  %v835_v22 = vmax.f32 %v825_v14, 0.0  ;;  %v829_v23 = vmax.f32 %v801_v15, 0.0 }
 0x122   : > { %871 = vst.msk [vmem:[%s175_s28 + $0x8] sm:$0xf] %vm868_vm0, %v1015_v17  ;;  %v1017_v24 = vpack.c.bf16 %v832_v11, %v832_v11  ;;  %v1016_v25 = vpack.c.bf16 %v831_v18, %v831_v18  ;;  %v833_v26 = vmax.f32 %v817_v19, 0.0 }
 0x123   : > { %875 = vst.msk [vmem:[%s175_s28 + $0x18] sm:$0xf] %vm868_vm0, %v1019_v20  ;;  %869 = vst.msk [vmem:[%s175_s28] sm:$0xf] %vm868_vm0, %v1013_v21  ;;  %v1020_v27 = vpack.c.bf16 %v835_v22, %v835_v22  ;;  %v1014_v13 = vpack.c.bf16 %v829_v23, %v829_v23 }
 0x124   : > { %873 = vst.msk [vmem:[%s175_s28 + $0x10] sm:$0xf] %vm868_vm0, %v1017_v24  ;;  %872 = vst.msk [vmem:[%s175_s28 + $0xc] sm:$0xf] %vm868_vm0, %v1016_v25  ;;  %v1018_v28 = vpack.c.bf16 %v833_v26, %v833_v26 }
 0x125   : > { %876 = vst.msk [vmem:[%s175_s28 + $0x1c] sm:$0xf] %vm868_vm0, %v1020_v27  ;;  %870 = vst.msk [vmem:[%s175_s28 + $0x4] sm:$0xf] %vm868_vm0, %v1014_v13 }
 0x126   : > { %874 = vst.msk [vmem:[%s175_s28 + $0x14] sm:$0xf] %vm868_vm0, %v1018_v28 }
 0x127 PF: > { %s13_s12 = sadd.s32 1, %s1236_s12  }
 0x128   : > { %p10_p4 = scmp.ge.s32.totalorder %s13_s12, 4  }
 0x12a   :  { %12 = sbr.rel (!%p10_p4) target bundleno = 1 (0x1), region = 62 }

// kernel: dqn_forward.7
= control target key start
LH: loop header
LB: loop body
LE: loop exit
PB: predicated region body
PF: predicated region fallthrough
CT: control target
= control target key end

     0   :  { %vm3166_vm0 = vmmov 0   ;;  %vm2339_vm1 = vcmask 261120   ;;  %s3902_s1 = inlined_call_operand.vmem [shape: bf16[3200,32], index: 1, kind: input, shape index: {}]   ;;  %s3903_s0 = inlined_call_operand.vmem [shape: bf16[16,3200], index: 0, kind: input, shape index: {}]   ;;  %s3904_s2 = inlined_call_operand.vmem [shape: f32[1,32], index: 2, kind: input, shape index: {}]   ;;  %s3905_s3 = inlined_call_operand.vmem [shape: bf16[32,128], index: 3, kind: input, shape index: {}]   ;;  %s3906_s4 = inlined_call_operand.vmem [shape: f32[1,128], index: 4, kind: input, shape index: {}]   ;;  %s3907_s5 = inlined_call_operand.vmem [shape: f32[16,128], index: 5, kind: output, shape index: {}]  }
   0x1   :  { %v2926_v0 = vld [vmem:[%s3902_s1 + $0x40] sm:$0xff]   ;;  %v2930_v4 = vld [vmem:[%s3902_s1 + $0x48] sm:$0xff]   ;;  %v2934_v8 = vld [vmem:[%s3902_s1 + $0x50] sm:$0xff]  }
   0x2   :  { %v2927_v1 = vld [vmem:[%s3902_s1] sm:$0xff]   ;;  %2620 = vmatprep.subr.bf16.mxu0 %v2926_v0  ;;  %v2931_v5 = vld [vmem:[%s3902_s1 + $0x8] sm:$0xff]   ;;  %v2935_v9 = vld [vmem:[%s3902_s1 + $0x10] sm:$0xff]  }
   0x3   :  { %v2928_v2 = vld [vmem:[%s3902_s1 + $0xc0] sm:$0xff]   ;;  %2621 = vmatpush3.bf16.msra.mxu0 %v2927_v1  ;;  %v2932_v6 = vld [vmem:[%s3902_s1 + $0xc8] sm:$0xff]   ;;  %v2936_v10 = vld [vmem:[%s3902_s1 + $0xd0] sm:$0xff]  }
   0x4   :  { %v2929_v3 = vld [vmem:[%s3902_s1 + $0x80] sm:$0xff]   ;;  %2642 = vmatprep.subr.bf16.mxu1 %v2928_v2  ;;  %2622 = vmatprep.subr.bf16.mxu0 %v2930_v4  ;;  %v2933_v7 = vld [vmem:[%s3902_s1 + $0x88] sm:$0xff]   ;;  %v2937_v11 = vld [vmem:[%s3902_s1 + $0x90] sm:$0xff]  }
   0x5   :  { %2643 = vmatpush3.bf16.msra.mxu1 %v2929_v3  ;;  %v2938_v12 = vld [vmem:[%s3902_s1 + $0x58] sm:$0xff]   ;;  %v2942_v16 = vld [vmem:[%s3902_s1 + $0x60] sm:$0xff]   ;;  %v2946_v20 = vld [vmem:[%s3902_s1 + $0x68] sm:$0xff]  }
   0x6   :  { %2644 = vmatprep.subr.bf16.mxu1 %v2932_v6  ;;  %v2939_v13 = vld [vmem:[%s3902_s1 + $0x18] sm:$0xff]   ;;  %v2943_v17 = vld [vmem:[%s3902_s1 + $0x20] sm:$0xff]   ;;  %v2947_v21 = vld [vmem:[%s3902_s1 + $0x28] sm:$0xff]  }
   0x7   :  { %2623 = vmatpush3.bf16.msra.mxu0 %v2931_v5  ;;  %v2940_v14 = vld [vmem:[%s3902_s1 + $0xd8] sm:$0xff]   ;;  %v2944_v18 = vld [vmem:[%s3902_s1 + $0xe0] sm:$0xff]   ;;  %v2948_v22 = vld [vmem:[%s3902_s1 + $0xe8] sm:$0xff]  }
   0x8   :  { %2624 = vmatprep.subr.bf16.mxu0 %v2934_v8  ;;  %v2941_v15 = vld [vmem:[%s3902_s1 + $0x98] sm:$0xff]   ;;  %v2945_v19 = vld [vmem:[%s3902_s1 + $0xa0] sm:$0xff]   ;;  %v2949_v23 = vld [vmem:[%s3902_s1 + $0xa8] sm:$0xff]  }
   0x9   :  { %2645 = vmatpush3.bf16.msra.mxu1 %v2933_v7  ;;  %v2950_v24 = vld [vmem:[%s3902_s1 + $0x70] sm:$0xff]   ;;  %v2954_v28 = vld [vmem:[%s3902_s1 + $0x78] sm:$0xff]   ;;  %v2957_v31 = vld [vmem:[%s3903_s0] ss:$100 sps:$4 sm:$0xff]  }
   0xa   :  { %2646 = vmatprep.subr.bf16.mxu1 %v2936_v10  ;;  %v2951_v25 = vld [vmem:[%s3902_s1 + $0x30] sm:$0xff]   ;;  %v2955_v29 = vld [vmem:[%s3902_s1 + $0x38] sm:$0xff]   ;;  %v2959_v32 = vld [vmem:[%s3903_s0 + $0x4] ss:$100 sps:$4 sm:$0xff]  }
   0xb   :  { %2625 = vmatpush3.bf16.msra.mxu0 %v2935_v9  ;;  %v2952_v26 = vld [vmem:[%s3902_s1 + $0xf0] sm:$0xff]   ;;  %v2956_v30 = vld [vmem:[%s3902_s1 + $0xf8] sm:$0xff]   ;;  %1812 = vmatprep.mubr.bf16.mxu0 %v2959_v32  ;;  %v2961_v34 = vld [vmem:[%s3902_s1 + $0x140] sm:$0xff]  }
   0xc   :  { %2626 = vmatprep.subr.bf16.mxu0 %v2938_v12  ;;  %v2953_v27 = vld [vmem:[%s3902_s1 + $0xb0] sm:$0xff]   ;;  %v2960_v33 = vld [vmem:[%s3902_s1 + $0xb8] sm:$0xff]   ;;  %v2962_v35 = vld [vmem:[%s3903_s0 + $0x8] ss:$100 sps:$4 sm:$0xff]  }
   0xd   :  { %2647 = vmatpush3.bf16.msra.mxu1 %v2937_v11  ;;  %v2964_v36 = vld [vmem:[%s3903_s0 + $0xc] ss:$100 sps:$4 sm:$0xff]   ;;  %v2965_v37 = vld [vmem:[%s3902_s1 + $0x100] sm:$0xff]   ;;  %v2976_v48 = vld [vmem:[%s3902_s1 + $0x158] sm:$0xff]  }
   0xe   :  { %2648 = vmatprep.subr.bf16.mxu1 %v2940_v14  ;;  %1853 = vmatprep.mubr.bf16.mxu1 %v2964_v36  ;;  %v2966_v38 = vld [vmem:[%s3902_s1 + $0x1c0] sm:$0xff]   ;;  %v2968_v40 = vld [vmem:[%s3902_s1 + $0x148] sm:$0xff]   ;;  %v2972_v44 = vld [vmem:[%s3902_s1 + $0x150] sm:$0xff]  }
   0xf   :  { %2627 = vmatpush3.bf16.msra.mxu0 %v2939_v13  ;;  %v2967_v39 = vld [vmem:[%s3902_s1 + $0x180] sm:$0xff]   ;;  %v2969_v41 = vld [vmem:[%s3902_s1 + $0x108] sm:$0xff]   ;;  %v2973_v45 = vld [vmem:[%s3902_s1 + $0x110] sm:$0xff]  }
  0x10   :  { %2628 = vmatprep.subr.bf16.mxu0 %v2942_v16  ;;  %v2970_v42 = vld [vmem:[%s3902_s1 + $0x1c8] sm:$0xff]   ;;  %v2974_v46 = vld [vmem:[%s3902_s1 + $0x1d0] sm:$0xff]   ;;  %v2977_v49 = vld [vmem:[%s3902_s1 + $0x118] sm:$0xff]  }
  0x11   :  { %2649 = vmatpush3.bf16.msra.mxu1 %v2941_v15  ;;  %v2971_v43 = vld [vmem:[%s3902_s1 + $0x188] sm:$0xff]   ;;  %v2975_v47 = vld [vmem:[%s3902_s1 + $0x190] sm:$0xff]   ;;  %v2978_v50 = vld [vmem:[%s3902_s1 + $0x1d8] sm:$0xff]  }
  0x12   :  { %2650 = vmatprep.subr.bf16.mxu1 %v2944_v18  ;;  %v2979_v51 = vld [vmem:[%s3902_s1 + $0x198] sm:$0xff]   ;;  %v2980_v52 = vld [vmem:[%s3902_s1 + $0x160] sm:$0xff]   ;;  %v2984_v56 = vld [vmem:[%s3902_s1 + $0x168] sm:$0xff]  }
  0x13   :  { %2629 = vmatpush3.bf16.msra.mxu0 %v2943_v17  ;;  %v2981_v53 = vld [vmem:[%s3902_s1 + $0x120] sm:$0xff]   ;;  %v2985_v57 = vld [vmem:[%s3902_s1 + $0x128] sm:$0xff]   ;;  %v2988_v60 = vld [vmem:[%s3902_s1 + $0x170] sm:$0xff]  }
  0x14   :  { %2630 = vmatprep.subr.bf16.mxu0 %v2946_v20  ;;  %v2982_v54 = vld [vmem:[%s3902_s1 + $0x1e0] sm:$0xff]   ;;  %v2986_v58 = vld [vmem:[%s3902_s1 + $0x1e8] sm:$0xff]   ;;  %v2989_v61 = vld [vmem:[%s3902_s1 + $0x130] sm:$0xff]  }
  0x15   :  { %2651 = vmatpush3.bf16.msra.mxu1 %v2945_v19  ;;  %v2983_v55 = vld [vmem:[%s3902_s1 + $0x1a0] sm:$0xff]   ;;  %v2987_v59 = vld [vmem:[%s3902_s1 + $0x1a8] sm:$0xff]   ;;  %v2990_v62 = vld [vmem:[%s3902_s1 + $0x1f0] sm:$0xff]  }
  0x16   :  { %2652 = vmatprep.subr.bf16.mxu1 %v2948_v22  ;;  %v2991_v63 = vld [vmem:[%s3902_s1 + $0x1b0] sm:$0xff]   ;;  %v2992_v0 = vld [vmem:[%s3902_s1 + $0x178] sm:$0xff]   ;;  %v2999_v6 = vld [vmem:[%s3902_s1 + $0x240] sm:$0xff]  }
  0x17   :  { %2631 = vmatpush3.bf16.msra.mxu0 %v2947_v21  ;;  %v2993_v1 = vld [vmem:[%s3902_s1 + $0x138] sm:$0xff]   ;;  %v2995_v3 = vld [vmem:[%s3903_s0 + $0x10] ss:$100 sps:$4 sm:$0xff]   ;;  %v3003_v9 = vld [vmem:[%s3902_s1 + $0x200] sm:$0xff]  }
  0x18   :  { %2632 = vmatprep.subr.bf16.mxu0 %v2950_v24  ;;  %v2994_v2 = vld [vmem:[%s3902_s1 + $0x1f8] sm:$0xff]   ;;  %v3004_v10 = vld [vmem:[%s3902_s1 + $0x2c0] sm:$0xff]   ;;  %v3006_v12 = vld [vmem:[%s3902_s1 + $0x248] sm:$0xff]  }
  0x19   :  { %2653 = vmatpush3.bf16.msra.mxu1 %v2949_v23  ;;  %v2997_v4 = vld [vmem:[%s3903_s0 + $0x14] ss:$100 sps:$4 sm:$0xff]   ;;  %v3002_v8 = vld [vmem:[%s3903_s0 + $0x1c] ss:$100 sps:$4 sm:$0xff]   ;;  %v3007_v13 = vld [vmem:[%s3902_s1 + $0x208] sm:$0xff]  }
  0x1a   :  { %2654 = vmatprep.subr.bf16.mxu1 %v2952_v26  ;;  %v2998_v5 = vld [vmem:[%s3902_s1 + $0x1b8] sm:$0xff]   ;;  %v3005_v11 = vld [vmem:[%s3902_s1 + $0x280] sm:$0xff]   ;;  %v3008_v14 = vld [vmem:[%s3902_s1 + $0x2c8] sm:$0xff]  }
  0x1b   :  { %2633 = vmatpush3.bf16.msra.mxu0 %v2951_v25  ;;  %v3000_v7 = vld [vmem:[%s3903_s0 + $0x18] ss:$100 sps:$4 sm:$0xff]   ;;  %v3009_v15 = vld [vmem:[%s3902_s1 + $0x288] sm:$0xff]   ;;  %v3010_v16 = vld [vmem:[%s3902_s1 + $0x250] sm:$0xff]  }
  0x1c   :  { %2634 = vmatprep.subr.bf16.mxu0 %v2954_v28  ;;  %v3011_v17 = vld [vmem:[%s3902_s1 + $0x210] sm:$0xff]   ;;  %v3014_v20 = vld [vmem:[%s3902_s1 + $0x258] sm:$0xff]   ;;  %v3018_v24 = vld [vmem:[%s3902_s1 + $0x260] sm:$0xff]  }
  0x1d   :  { %2655 = vmatpush3.bf16.msra.mxu1 %v2953_v27  ;;  %v3012_v18 = vld [vmem:[%s3902_s1 + $0x2d0] sm:$0xff]   ;;  %v3015_v21 = vld [vmem:[%s3902_s1 + $0x218] sm:$0xff]   ;;  %v3019_v25 = vld [vmem:[%s3902_s1 + $0x220] sm:$0xff]  }
  0x1e   :  { %2656 = vmatprep.subr.bf16.mxu1 %v2956_v30  ;;  %v3013_v19 = vld [vmem:[%s3902_s1 + $0x290] sm:$0xff]   ;;  %v3016_v22 = vld [vmem:[%s3902_s1 + $0x2d8] sm:$0xff]   ;;  %v3020_v26 = vld [vmem:[%s3902_s1 + $0x2e0] sm:$0xff]  }
  0x1f   :  { %2635 = vmatpush3.bf16.msra.mxu0 %v2955_v29  ;;  %v3017_v23 = vld [vmem:[%s3902_s1 + $0x298] sm:$0xff]   ;;  %v3021_v27 = vld [vmem:[%s3902_s1 + $0x2a0] sm:$0xff]   ;;  %v3022_v28 = vld [vmem:[%s3902_s1 + $0x268] sm:$0xff]  }
  0x20   :  { %2664 = vmatprep.subr.bf16.mxu0 %v2961_v34  ;;  %v3023_v29 = vld [vmem:[%s3902_s1 + $0x228] sm:$0xff]   ;;  %v3026_v32 = vld [vmem:[%s3902_s1 + $0x270] sm:$0xff]   ;;  %v3030_v36 = vld [vmem:[%s3902_s1 + $0x278] sm:$0xff]  }
  0x21   :  { %2657 = vmatpush3.bf16.msra.mxu1 %v2960_v33  ;;  %v3024_v30 = vld [vmem:[%s3902_s1 + $0x2e8] sm:$0xff]   ;;  %v3027_v33 = vld [vmem:[%s3902_s1 + $0x230] sm:$0xff]  }
  0x22   :  { %1813 = vmatmul.mubr.bf16.vlgmr.msra.gmra.mrb[0].mxu0 %v2957_v31  ;;  %2686 = vmatprep.subr.bf16.mxu1 %v2966_v38  ;;  %v3025_v31 = vld [vmem:[%s3902_s1 + $0x2a8] sm:$0xff]   ;;  %v3028_v34 = vld [vmem:[%s3902_s1 + $0x2f0] sm:$0xff]   ;;  %v3032_v38 = vld [vmem:[%s3902_s1 + $0x2f8] sm:$0xff]  }
  0x23   :  { %2665 = vmatpush3.bf16.msra.mxu0 %v2965_v37  ;;  %1894 = vmatprep.mubr.bf16.mxu0 %v2997_v4  ;;  %v3031_v37 = vld [vmem:[%s3902_s1 + $0x238] sm:$0xff]   ;;  %v3064_v4 = vld [vmem:[%s3902_s1 + $0x370] sm:$0xff]  }
  0x24   :  { %1854 = vmatmul.mubr.bf16.vlgmr.msra.gmra.mrb[0].mxu1 %v2962_v35  ;;  %2666 = vmatprep.subr.bf16.mxu0 %v2968_v40  ;;  %v3029_v35 = vld [vmem:[%s3902_s1 + $0x2b0] sm:$0xff]   ;;  %v3035_v40 = vld [vmem:[%s3903_s0 + $0x24] ss:$100 sps:$4 sm:$0xff]  }
  0x25   :  { %2687 = vmatpush3.bf16.msra.mxu1 %v2967_v39  ;;  %1935 = vmatprep.mubr.bf16.mxu1 %v3002_v8  ;;  %v3033_v39 = vld [vmem:[%s3903_s0 + $0x20] ss:$100 sps:$4 sm:$0xff]   ;;  %v3068_v8 = vld [vmem:[%s3902_s1 + $0x378] sm:$0xff]  }
  0x26   :  { %2688 = vmatprep.subr.bf16.mxu1 %v2970_v42  ;;  %v3037_v42 = vld [vmem:[%s3902_s1 + $0x340] sm:$0xff]  }
  0x27   :  { %2667 = vmatpush3.bf16.msra.mxu0 %v2969_v41  ;;  %v3036_v41 = vld [vmem:[%s3902_s1 + $0x2b8] sm:$0xff]  }
  0x28   :  { %2668 = vmatprep.subr.bf16.mxu0 %v2972_v44  ;;  %v3040_v44 = vld [vmem:[%s3903_s0 + $0x2c] ss:$100 sps:$4 sm:$0xff]  }
  0x29   :  { %2689 = vmatpush3.bf16.msra.mxu1 %v2971_v43  ;;  %v3038_v43 = vld [vmem:[%s3903_s0 + $0x28] ss:$100 sps:$4 sm:$0xff]  }
  0x2a   :  { %2690 = vmatprep.subr.bf16.mxu1 %v2974_v46  ;;  %v3042_v46 = vld [vmem:[%s3902_s1 + $0x3c0] sm:$0xff]  }
  0x2b   :  { %2669 = vmatpush3.bf16.msra.mxu0 %v2973_v45  ;;  %v3041_v45 = vld [vmem:[%s3902_s1 + $0x300] sm:$0xff]  }
  0x2c   :  { %2670 = vmatprep.subr.bf16.mxu0 %v2976_v48  ;;  %v3044_v48 = vld [vmem:[%s3902_s1 + $0x348] sm:$0xff]  }
  0x2d   :  { %2691 = vmatpush3.bf16.msra.mxu1 %v2975_v47  ;;  %v3043_v47 = vld [vmem:[%s3902_s1 + $0x380] sm:$0xff]  }
  0x2e   :  { %2692 = vmatprep.subr.bf16.mxu1 %v2978_v50  ;;  %v3046_v50 = vld [vmem:[%s3902_s1 + $0x3c8] sm:$0xff]  }
  0x2f   :  { %2671 = vmatpush3.bf16.msra.mxu0 %v2977_v49  ;;  %v3045_v49 = vld [vmem:[%s3902_s1 + $0x308] sm:$0xff]  }
  0x30   :  { %2672 = vmatprep.subr.bf16.mxu0 %v2980_v52  ;;  %v3048_v52 = vld [vmem:[%s3902_s1 + $0x350] sm:$0xff]  }
  0x31   :  { %2693 = vmatpush3.bf16.msra.mxu1 %v2979_v51  ;;  %v3047_v51 = vld [vmem:[%s3902_s1 + $0x388] sm:$0xff]  }
  0x32   :  { %2694 = vmatprep.subr.bf16.mxu1 %v2982_v54  ;;  %v3050_v54 = vld [vmem:[%s3902_s1 + $0x3d0] sm:$0xff]  }
  0x33   :  { %2673 = vmatpush3.bf16.msra.mxu0 %v2981_v53  ;;  %v3049_v53 = vld [vmem:[%s3902_s1 + $0x310] sm:$0xff]  }
  0x34   :  { %2674 = vmatprep.subr.bf16.mxu0 %v2984_v56  ;;  %v3052_v56 = vld [vmem:[%s3902_s1 + $0x358] sm:$0xff]  }
  0x35   :  { %2695 = vmatpush3.bf16.msra.mxu1 %v2983_v55  ;;  %v3051_v55 = vld [vmem:[%s3902_s1 + $0x390] sm:$0xff]  }
  0x36   :  { %2696 = vmatprep.subr.bf16.mxu1 %v2986_v58  ;;  %v3054_v58 = vld [vmem:[%s3902_s1 + $0x3d8] sm:$0xff]  }
  0x37   :  { %2675 = vmatpush3.bf16.msra.mxu0 %v2985_v57  ;;  %v3053_v57 = vld [vmem:[%s3902_s1 + $0x318] sm:$0xff]  }
  0x38   :  { %2676 = vmatprep.subr.bf16.mxu0 %v2988_v60  ;;  %v3056_v60 = vld [vmem:[%s3902_s1 + $0x360] sm:$0xff]  }
  0x39   :  { %2697 = vmatpush3.bf16.msra.mxu1 %v2987_v59  ;;  %v3055_v59 = vld [vmem:[%s3902_s1 + $0x398] sm:$0xff]  }
  0x3a   :  { %2698 = vmatprep.subr.bf16.mxu1 %v2990_v62  ;;  %v3058_v62 = vld [vmem:[%s3902_s1 + $0x3e0] sm:$0xff]  }
  0x3b   :  { %2677 = vmatpush3.bf16.msra.mxu0 %v2989_v61  ;;  %v3057_v61 = vld [vmem:[%s3902_s1 + $0x320] sm:$0xff]  }
  0x3c   :  { %2678 = vmatprep.subr.bf16.mxu0 %v2992_v0  ;;  %v3060_v0 = vld [vmem:[%s3902_s1 + $0x368] sm:$0xff]  }
  0x3d   :  { %2699 = vmatpush3.bf16.msra.mxu1 %v2991_v63  ;;  %v3059_v63 = vld [vmem:[%s3902_s1 + $0x3a0] sm:$0xff]  }
  0x3e   :  { %2700 = vmatprep.subr.bf16.mxu1 %v2994_v2  ;;  %v3062_v2 = vld [vmem:[%s3902_s1 + $0x3e8] sm:$0xff]  }
  0x3f   :  { %2679 = vmatpush3.bf16.msra.mxu0 %v2993_v1  ;;  %v3061_v1 = vld [vmem:[%s3902_s1 + $0x328] sm:$0xff]  }
  0x40   :  { %2708 = vmatprep.subr.bf16.mxu0 %v2999_v6  ;;  %v3066_v6 = vld [vmem:[%s3902_s1 + $0x3f0] sm:$0xff]  }
  0x41   :  { %2701 = vmatpush3.bf16.msra.mxu1 %v2998_v5  ;;  %v3065_v5 = vld [vmem:[%s3902_s1 + $0x330] sm:$0xff]  }
  0x42   :  { %1895 = vmatmul.mubr.bf16.vlgmr.msra.gmra.mrb[4].mxu0 %v2995_v3  ;;  %2730 = vmatprep.subr.bf16.mxu1 %v3004_v10  ;;  %v3063_v3 = vld [vmem:[%s3902_s1 + $0x3a8] sm:$0xff]   ;;  %v3070_v10 = vld [vmem:[%s3902_s1 + $0x3f8] sm:$0xff]  }
  0x43   :  { %2709 = vmatpush3.bf16.msra.mxu0 %v3003_v9  ;;  %1976 = vmatprep.mubr.bf16.mxu0 %v3035_v40  ;;  %v3069_v9 = vld [vmem:[%s3902_s1 + $0x338] sm:$0xff]   ;;  %v3102_v40 = vld [vmem:[%s3902_s1 + $0x470] sm:$0xff]  }
  0x44   :  { %1936 = vmatmul.mubr.bf16.vlgmr.msra.gmra.mrb[4].mxu1 %v3000_v7  ;;  %2710 = vmatprep.subr.bf16.mxu0 %v3006_v12  ;;  %v3067_v7 = vld [vmem:[%s3902_s1 + $0x3b0] sm:$0xff]  }
  0x45   :  { %2731 = vmatpush3.bf16.msra.mxu1 %v3005_v11  ;;  %2017 = vmatprep.mubr.bf16.mxu1 %v3040_v44  ;;  %v3071_v11 = vld [vmem:[%s3903_s0 + $0x30] ss:$100 sps:$4 sm:$0xff]   ;;  %v3106_v44 = vld [vmem:[%s3902_s1 + $0x478] sm:$0xff]  }
  0x46   :  { %2732 = vmatprep.subr.bf16.mxu1 %v3008_v14  ;;  %v3073_v12 = vld [vmem:[%s3903_s0 + $0x34] ss:$100 sps:$4 sm:$0xff]   ;;  %v3075_v14 = vld [vmem:[%s3902_s1 + $0x440] sm:$0xff]  }
  0x47   :  { %2711 = vmatpush3.bf16.msra.mxu0 %v3007_v13  ;;  %v3074_v13 = vld [vmem:[%s3902_s1 + $0x3b8] sm:$0xff]  }
  0x48   :  { %2712 = vmatprep.subr.bf16.mxu0 %v3010_v16  ;;  %v3078_v16 = vld [vmem:[%s3903_s0 + $0x3c] ss:$100 sps:$4 sm:$0xff]  }
  0x49   :  { %2733 = vmatpush3.bf16.msra.mxu1 %v3009_v15  ;;  %v3076_v15 = vld [vmem:[%s3903_s0 + $0x38] ss:$100 sps:$4 sm:$0xff]  }
  0x4a   :  { %2734 = vmatprep.subr.bf16.mxu1 %v3012_v18  ;;  %v3080_v18 = vld [vmem:[%s3902_s1 + $0x4c0] sm:$0xff]  }
  0x4b   :  { %2713 = vmatpush3.bf16.msra.mxu0 %v3011_v17  ;;  %v3079_v17 = vld [vmem:[%s3902_s1 + $0x400] sm:$0xff]  }
  0x4c   :  { %2714 = vmatprep.subr.bf16.mxu0 %v3014_v20  ;;  %v3082_v20 = vld [vmem:[%s3902_s1 + $0x448] sm:$0xff]  }
  0x4d   :  { %2735 = vmatpush3.bf16.msra.mxu1 %v3013_v19  ;;  %v3081_v19 = vld [vmem:[%s3902_s1 + $0x480] sm:$0xff]  }
  0x4e   :  { %2736 = vmatprep.subr.bf16.mxu1 %v3016_v22  ;;  %v3084_v22 = vld [vmem:[%s3902_s1 + $0x4c8] sm:$0xff]  }
  0x4f   :  { %2715 = vmatpush3.bf16.msra.mxu0 %v3015_v21  ;;  %v3083_v21 = vld [vmem:[%s3902_s1 + $0x408] sm:$0xff]  }
  0x50   :  { %2716 = vmatprep.subr.bf16.mxu0 %v3018_v24  ;;  %v3086_v24 = vld [vmem:[%s3902_s1 + $0x450] sm:$0xff]  }
  0x51   :  { %2737 = vmatpush3.bf16.msra.mxu1 %v3017_v23  ;;  %v3085_v23 = vld [vmem:[%s3902_s1 + $0x488] sm:$0xff]  }
  0x52   :  { %2738 = vmatprep.subr.bf16.mxu1 %v3020_v26  ;;  %v3088_v26 = vld [vmem:[%s3902_s1 + $0x4d0] sm:$0xff]  }
  0x53   :  { %2717 = vmatpush3.bf16.msra.mxu0 %v3019_v25  ;;  %v3087_v25 = vld [vmem:[%s3902_s1 + $0x410] sm:$0xff]  }
  0x54   :  { %2718 = vmatprep.subr.bf16.mxu0 %v3022_v28  ;;  %v3090_v28 = vld [vmem:[%s3902_s1 + $0x458] sm:$0xff]  }
  0x55   :  { %2739 = vmatpush3.bf16.msra.mxu1 %v3021_v27  ;;  %v3089_v27 = vld [vmem:[%s3902_s1 + $0x490] sm:$0xff]  }
  0x56   :  { %2740 = vmatprep.subr.bf16.mxu1 %v3024_v30  ;;  %v3092_v30 = vld [vmem:[%s3902_s1 + $0x4d8] sm:$0xff]  }
  0x57   :  { %2719 = vmatpush3.bf16.msra.mxu0 %v3023_v29  ;;  %v3091_v29 = vld [vmem:[%s3902_s1 + $0x418] sm:$0xff]  }
  0x58   :  { %2720 = vmatprep.subr.bf16.mxu0 %v3026_v32  ;;  %v3094_v32 = vld [vmem:[%s3902_s1 + $0x460] sm:$0xff]  }
  0x59   :  { %2741 = vmatpush3.bf16.msra.mxu1 %v3025_v31  ;;  %v3093_v31 = vld [vmem:[%s3902_s1 + $0x498] sm:$0xff]  }
  0x5a   :  { %2742 = vmatprep.subr.bf16.mxu1 %v3028_v34  ;;  %v3096_v34 = vld [vmem:[%s3902_s1 + $0x4e0] sm:$0xff]  }
  0x5b   :  { %2721 = vmatpush3.bf16.msra.mxu0 %v3027_v33  ;;  %v3095_v33 = vld [vmem:[%s3902_s1 + $0x420] sm:$0xff]  }
  0x5c   :  { %2722 = vmatprep.subr.bf16.mxu0 %v3030_v36  ;;  %v3098_v36 = vld [vmem:[%s3902_s1 + $0x468] sm:$0xff]  }
  0x5d   :  { %2743 = vmatpush3.bf16.msra.mxu1 %v3029_v35  ;;  %v3097_v35 = vld [vmem:[%s3902_s1 + $0x4a0] sm:$0xff]  }
  0x5e   :  { %2744 = vmatprep.subr.bf16.mxu1 %v3032_v38  ;;  %v3100_v38 = vld [vmem:[%s3902_s1 + $0x4e8] sm:$0xff]  }
  0x5f   :  { %2723 = vmatpush3.bf16.msra.mxu0 %v3031_v37  ;;  %v3099_v37 = vld [vmem:[%s3902_s1 + $0x428] sm:$0xff]  }
  0x60   :  { %2752 = vmatprep.subr.bf16.mxu0 %v3037_v42  ;;  %v3104_v42 = vld [vmem:[%s3902_s1 + $0x4f0] sm:$0xff]  }
  0x61   :  { %2745 = vmatpush3.bf16.msra.mxu1 %v3036_v41  ;;  %v3103_v41 = vld [vmem:[%s3902_s1 + $0x430] sm:$0xff]  }
  0x62   :  { %1977 = vmatmul.mubr.bf16.vlgmr.msra.gmra.mrb[8].mxu0 %v3033_v39  ;;  %2774 = vmatprep.subr.bf16.mxu1 %v3042_v46  ;;  %v3101_v39 = vld [vmem:[%s3902_s1 + $0x4a8] sm:$0xff]   ;;  %v3108_v46 = vld [vmem:[%s3902_s1 + $0x4f8] sm:$0xff]  }
  0x63   :  { %2753 = vmatpush3.bf16.msra.mxu0 %v3041_v45  ;;  %2058 = vmatprep.mubr.bf16.mxu0 %v3073_v12  ;;  %v3107_v45 = vld [vmem:[%s3902_s1 + $0x438] sm:$0xff]   ;;  %v3140_v12 = vld [vmem:[%s3902_s1 + $0x570] sm:$0xff]  }
  0x64   :  { %2018 = vmatmul.mubr.bf16.vlgmr.msra.gmra.mrb[8].mxu1 %v3038_v43  ;;  %2754 = vmatprep.subr.bf16.mxu0 %v3044_v48  ;;  %v3105_v43 = vld [vmem:[%s3902_s1 + $0x4b0] sm:$0xff]   ;;  %v3111_v48 = vld [vmem:[%s3903_s0 + $0x44] ss:$100 sps:$4 sm:$0xff]  }
  0x65   :  { %2775 = vmatpush3.bf16.msra.mxu1 %v3043_v47  ;;  %2099 = vmatprep.mubr.bf16.mxu1 %v3078_v16  ;;  %v3109_v47 = vld [vmem:[%s3903_s0 + $0x40] ss:$100 sps:$4 sm:$0xff]   ;;  %v3144_v16 = vld [vmem:[%s3902_s1 + $0x578] sm:$0xff]  }
  0x66   :  { %2776 = vmatprep.subr.bf16.mxu1 %v3046_v50  ;;  %v3113_v50 = vld [vmem:[%s3902_s1 + $0x540] sm:$0xff]  }
  0x67   :  { %2755 = vmatpush3.bf16.msra.mxu0 %v3045_v49  ;;  %v3112_v49 = vld [vmem:[%s3902_s1 + $0x4b8] sm:$0xff]  }
  0x68   :  { %2756 = vmatprep.subr.bf16.mxu0 %v3048_v52  ;;  %v3116_v52 = vld [vmem:[%s3903_s0 + $0x4c] ss:$100 sps:$4 sm:$0xff]  }
  0x69   :  { %2777 = vmatpush3.bf16.msra.mxu1 %v3047_v51  ;;  %v3114_v51 = vld [vmem:[%s3903_s0 + $0x48] ss:$100 sps:$4 sm:$0xff]  }
  0x6a   :  { %2778 = vmatprep.subr.bf16.mxu1 %v3050_v54  ;;  %v3118_v54 = vld [vmem:[%s3902_s1 + $0x5c0] sm:$0xff]  }
  0x6b   :  { %2757 = vmatpush3.bf16.msra.mxu0 %v3049_v53  ;;  %v3117_v53 = vld [vmem:[%s3902_s1 + $0x500] sm:$0xff]  }
  0x6c   :  { %2758 = vmatprep.subr.bf16.mxu0 %v3052_v56  ;;  %v3120_v56 = vld [vmem:[%s3902_s1 + $0x548] sm:$0xff]  }
  0x6d   :  { %2779 = vmatpush3.bf16.msra.mxu1 %v3051_v55  ;;  %v3119_v55 = vld [vmem:[%s3902_s1 + $0x580] sm:$0xff]  }
  0x6e   :  { %2780 = vmatprep.subr.bf16.mxu1 %v3054_v58  ;;  %v3122_v58 = vld [vmem:[%s3902_s1 + $0x5c8] sm:$0xff]  }
  0x6f   :  { %2759 = vmatpush3.bf16.msra.mxu0 %v3053_v57  ;;  %v3121_v57 = vld [vmem:[%s3902_s1 + $0x508] sm:$0xff]  }
  0x70   :  { %2760 = vmatprep.subr.bf16.mxu0 %v3056_v60  ;;  %v3124_v60 = vld [vmem:[%s3902_s1 + $0x550] sm:$0xff]  }
  0x71   :  { %2781 = vmatpush3.bf16.msra.mxu1 %v3055_v59  ;;  %v3123_v59 = vld [vmem:[%s3902_s1 + $0x588] sm:$0xff]  }
  0x72   :  { %2782 = vmatprep.subr.bf16.mxu1 %v3058_v62  ;;  %v3126_v62 = vld [vmem:[%s3902_s1 + $0x5d0] sm:$0xff]  }
  0x73   :  { %2761 = vmatpush3.bf16.msra.mxu0 %v3057_v61  ;;  %v3125_v61 = vld [vmem:[%s3902_s1 + $0x510] sm:$0xff]  }
  0x74   :  { %2762 = vmatprep.subr.bf16.mxu0 %v3060_v0  ;;  %v3128_v0 = vld [vmem:[%s3902_s1 + $0x558] sm:$0xff]  }
  0x75   :  { %2783 = vmatpush3.bf16.msra.mxu1 %v3059_v63  ;;  %v3127_v63 = vld [vmem:[%s3902_s1 + $0x590] sm:$0xff]  }
  0x76   :  { %2784 = vmatprep.subr.bf16.mxu1 %v3062_v2  ;;  %v3130_v2 = vld [vmem:[%s3902_s1 + $0x5d8] sm:$0xff]  }
  0x77   :  { %2763 = vmatpush3.bf16.msra.mxu0 %v3061_v1  ;;  %v3129_v1 = vld [vmem:[%s3902_s1 + $0x518] sm:$0xff]  }
  0x78   :  { %2764 = vmatprep.subr.bf16.mxu0 %v3064_v4  ;;  %v3132_v4 = vld [vmem:[%s3902_s1 + $0x560] sm:$0xff]  }
  0x79   :  { %2785 = vmatpush3.bf16.msra.mxu1 %v3063_v3  ;;  %v3131_v3 = vld [vmem:[%s3902_s1 + $0x598] sm:$0xff]  }
  0x7a   :  { %2786 = vmatprep.subr.bf16.mxu1 %v3066_v6  ;;  %v3134_v6 = vld [vmem:[%s3902_s1 + $0x5e0] sm:$0xff]  }
  0x7b   :  { %2765 = vmatpush3.bf16.msra.mxu0 %v3065_v5  ;;  %v3133_v5 = vld [vmem:[%s3902_s1 + $0x520] sm:$0xff]  }
  0x7c   :  { %2766 = vmatprep.subr.bf16.mxu0 %v3068_v8  ;;  %v3136_v8 = vld [vmem:[%s3902_s1 + $0x568] sm:$0xff]  }
  0x7d   :  { %2787 = vmatpush3.bf16.msra.mxu1 %v3067_v7  ;;  %v3135_v7 = vld [vmem:[%s3902_s1 + $0x5a0] sm:$0xff]  }
  0x7e   :  { %2788 = vmatprep.subr.bf16.mxu1 %v3070_v10  ;;  %v3138_v10 = vld [vmem:[%s3902_s1 + $0x5e8] sm:$0xff]  }
  0x7f   :  { %2767 = vmatpush3.bf16.msra.mxu0 %v3069_v9  ;;  %v3137_v9 = vld [vmem:[%s3902_s1 + $0x528] sm:$0xff]  }
  0x80   :  { %2796 = vmatprep.subr.bf16.mxu0 %v3075_v14  ;;  %v3142_v14 = vld [vmem:[%s3902_s1 + $0x5f0] sm:$0xff]  }
  0x81   :  { %2789 = vmatpush3.bf16.msra.mxu1 %v3074_v13  ;;  %v3141_v13 = vld [vmem:[%s3902_s1 + $0x530] sm:$0xff]  }
  0x82   :  { %2059 = vmatmul.mubr.bf16.vlgmr.msra.gmra.mrb[12].mxu0 %v3071_v11  ;;  %2818 = vmatprep.subr.bf16.mxu1 %v3080_v18  ;;  %v3139_v11 = vld [vmem:[%s3902_s1 + $0x5a8] sm:$0xff]   ;;  %v3146_v18 = vld [vmem:[%s3902_s1 + $0x5f8] sm:$0xff]  }
  0x83   :  { %2797 = vmatpush3.bf16.msra.mxu0 %v3079_v17  ;;  %2140 = vmatprep.mubr.bf16.mxu0 %v3111_v48  ;;  %v3145_v17 = vld [vmem:[%s3902_s1 + $0x538] sm:$0xff]  }
  0x84   :  { %2100 = vmatmul.mubr.bf16.vlgmr.msra.gmra.mrb[12].mxu1 %v3076_v15  ;;  %2798 = vmatprep.subr.bf16.mxu0 %v3082_v20  ;;  %v3143_v15 = vld [vmem:[%s3902_s1 + $0x5b0] sm:$0xff]  }
  0x85   :  { %2819 = vmatpush3.bf16.msra.mxu1 %v3081_v19  ;;  %2181 = vmatprep.mubr.bf16.mxu1 %v3116_v52  ;;  %v3147_v19 = vld [vmem:[%s3903_s0 + $0x50] ss:$100 sps:$4 sm:$0xff]  }
  0x86   :  { %2820 = vmatprep.subr.bf16.mxu1 %v3084_v22  ;;  %v3149_v20 = vld [vmem:[%s3903_s0 + $0x54] ss:$100 sps:$4 sm:$0xff]   ;;  %v3165_v22 = vmov 0.0  }
  0x87   :  { %2799 = vmatpush3.bf16.msra.mxu0 %v3083_v21  ;;  %v3150_v21 = vld [vmem:[%s3902_s1 + $0x5b8] sm:$0xff]  }
  0x88   :  { %2800 = vmatprep.subr.bf16.mxu0 %v3086_v24  ;;  %v3153_v24 = vld [vmem:[%s3903_s0 + $0x5c] ss:$100 sps:$4 sm:$0xff]  }
  0x89   :  { %2821 = vmatpush3.bf16.msra.mxu1 %v3085_v23  ;;  %v3151_v23 = vld [vmem:[%s3903_s0 + $0x58] ss:$100 sps:$4 sm:$0xff]  }
  0x8a   :  { %2822 = vmatprep.subr.bf16.mxu1 %v3088_v26  ;;  %v3155_v26 = vld [vmem:[%s3902_s1 + $0x608] sm:$0xff]  }
  0x8b   :  { %2801 = vmatpush3.bf16.msra.mxu0 %v3087_v25  ;;  %v3154_v25 = vld [vmem:[%s3902_s1 + $0x600] sm:$0xff]  }
  0x8c   :  { %2802 = vmatprep.subr.bf16.mxu0 %v3090_v28  ;;  %v3157_v28 = vld [vmem:[%s3902_s1 + $0x618] sm:$0xff]  }
  0x8d   :  { %2823 = vmatpush3.bf16.msra.mxu1 %v3089_v27  ;;  %v3156_v27 = vld [vmem:[%s3902_s1 + $0x610] sm:$0xff]  }
  0x8e   :  { %2824 = vmatprep.subr.bf16.mxu1 %v3092_v30  ;;  %v3159_v30 = vld [vmem:[%s3902_s1 + $0x628] sm:$0xff]  }
  0x8f   :  { %2803 = vmatpush3.bf16.msra.mxu0 %v3091_v29  ;;  %v3158_v29 = vld [vmem:[%s3902_s1 + $0x620] sm:$0xff]  }
  0x90   :  { %2804 = vmatprep.subr.bf16.mxu0 %v3094_v32  ;;  %v3161_v32 = vld [vmem:[%s3902_s1 + $0x638] sm:$0xff]  }
  0x91   :  { %2825 = vmatpush3.bf16.msra.mxu1 %v3093_v31  ;;  %v3160_v31 = vld [vmem:[%s3902_s1 + $0x630] sm:$0xff]  }
  0x92   :  { %2826 = vmatprep.subr.bf16.mxu1 %v3096_v34 }
  0x93   :  { %2805 = vmatpush3.bf16.msra.mxu0 %v3095_v33  ;;  %v3162_v33 = vld [vmem:[%s3903_s0 + $0x60] ss:$100 sps:$4 sm:$0xff]  }
  0x94   :  { %2806 = vmatprep.subr.bf16.mxu0 %v3098_v36 }
  0x95   :  { %2827 = vmatpush3.bf16.msra.mxu1 %v3097_v35  ;;  %v2390_v35 = vld [vmem:[%s3904_s2] ss:$0 sm:$0xff] }
  0x96   :  { %2828 = vmatprep.subr.bf16.mxu1 %v3100_v38 }
  0x97   :  { %2807 = vmatpush3.bf16.msra.mxu0 %v3099_v37 }
  0x98   :  { %2808 = vmatprep.subr.bf16.mxu0 %v3102_v40 }
  0x99   :  { %2829 = vmatpush3.bf16.msra.mxu1 %v3101_v39 }
  0x9a   :  { %2830 = vmatprep.subr.bf16.mxu1 %v3104_v42 }
  0x9b   :  { %2809 = vmatpush3.bf16.msra.mxu0 %v3103_v41 }
  0x9c   :  { %2810 = vmatprep.subr.bf16.mxu0 %v3106_v44 }
  0x9d   :  { %2831 = vmatpush3.bf16.msra.mxu1 %v3105_v43 }
  0x9e   :  { %2832 = vmatprep.subr.bf16.mxu1 %v3108_v46 }
  0x9f   :  { %2811 = vmatpush3.bf16.msra.mxu0 %v3107_v45 }
  0xa0   :  { %2840 = vmatprep.subr.bf16.mxu0 %v3113_v50 }
  0xa1   :  { %2833 = vmatpush3.bf16.msra.mxu1 %v3112_v49 }
  0xa2   :  { %2141 = vmatmul.mubr.bf16.vlgmr.msra.gmra.mrb[16].mxu0 %v3109_v47  ;;  %2862 = vmatprep.subr.bf16.mxu1 %v3118_v54 }
  0xa3   :  { %2841 = vmatpush3.bf16.msra.mxu0 %v3117_v53  ;;  %2222 = vmatprep.mubr.bf16.mxu0 %v3149_v20  ;;  %v3164_v20 = vld [vmem:[%s3905_s3 + $0x8] sm:$0xff]  }
  0xa4   :  { %2182 = vmatmul.mubr.bf16.vlgmr.msra.gmra.mrb[16].mxu1 %v3114_v51  ;;  %2842 = vmatprep.subr.bf16.mxu0 %v3120_v56 }
  0xa5   :  { %2863 = vmatpush3.bf16.msra.mxu1 %v3119_v55  ;;  %2263 = vmatprep.mubr.bf16.mxu1 %v3153_v24 }
  0xa6   :  { %2864 = vmatprep.subr.bf16.mxu1 %v3122_v58 }
  0xa7   :  { %2843 = vmatpush3.bf16.msra.mxu0 %v3121_v57 }
  0xa8   :  { %2844 = vmatprep.subr.bf16.mxu0 %v3124_v60 }
  0xa9   :  { %2865 = vmatpush3.bf16.msra.mxu1 %v3123_v59 }
  0xaa   :  { %2866 = vmatprep.subr.bf16.mxu1 %v3126_v62 }
  0xab   :  { %2845 = vmatpush3.bf16.msra.mxu0 %v3125_v61 }
  0xac   :  { %2846 = vmatprep.subr.bf16.mxu0 %v3128_v0 }
  0xad   :  { %2867 = vmatpush3.bf16.msra.mxu1 %v3127_v63 }
  0xae   :  { %2868 = vmatprep.subr.bf16.mxu1 %v3130_v2 }
  0xaf   :  { %2847 = vmatpush3.bf16.msra.mxu0 %v3129_v1 }
  0xb0   :  { %2848 = vmatprep.subr.bf16.mxu0 %v3132_v4 }
  0xb1   :  { %2869 = vmatpush3.bf16.msra.mxu1 %v3131_v3 }
  0xb2   :  { %2870 = vmatprep.subr.bf16.mxu1 %v3134_v6 }
  0xb3   :  { %2849 = vmatpush3.bf16.msra.mxu0 %v3133_v5 }
  0xb4   :  { %2850 = vmatprep.subr.bf16.mxu0 %v3136_v8 }
  0xb5   :  { %2871 = vmatpush3.bf16.msra.mxu1 %v3135_v7 }
  0xb6   :  { %2872 = vmatprep.subr.bf16.mxu1 %v3138_v10 }
  0xb7   :  { %2851 = vmatpush3.bf16.msra.mxu0 %v3137_v9 }
  0xb8   :  { %2852 = vmatprep.subr.bf16.mxu0 %v3140_v12 }
  0xb9   :  { %2873 = vmatpush3.bf16.msra.mxu1 %v3139_v11 }
  0xba   :  { %2874 = vmatprep.subr.bf16.mxu1 %v3142_v14 }
  0xbb   :  { %2853 = vmatpush3.bf16.msra.mxu0 %v3141_v13 }
  0xbc   :  { %2854 = vmatprep.subr.bf16.mxu0 %v3144_v16 }
  0xbd   :  { %2875 = vmatpush3.bf16.msra.mxu1 %v3143_v15 }
  0xbe   :  { %2876 = vmatprep.subr.bf16.mxu1 %v3146_v18 }
  0xbf   :  { %2855 = vmatpush3.bf16.msra.mxu0 %v3145_v17 }
  0xc0   :  { %2896 = vmatprep.subr.bf16.mxu0 %v3165_v22 }
  0xc1   :  { %2877 = vmatpush3.bf16.msra.mxu1 %v3150_v21 }
  0xc2   :  { %2223 = vmatmul.mubr.bf16.vlgmr.msra.gmra.mrb[20].mxu0 %v3147_v19  ;;  %2916 = vmatprep.subr.bf16.mxu1 %v3165_v22  ;;  %v3163_v19 = vld [vmem:[%s3905_s3] sm:$0xff]  }
  0xc3   :  { %2912 = vmatprep.mubr.msk.bf16.mxu0 %vm3166_vm0, %v3165_v22  ;;  %2897 = vmatpush3.bf16.msra.mxu0 %v3154_v25 }
  0xc4   :  { %2264 = vmatmul.mubr.bf16.vlgmr.msra.gmra.mrb[20].mxu1 %v3151_v23  ;;  %2898 = vmatprep.subr.bf16.mxu0 %v3165_v22 }
  0xc5   :  { %2920 = vmatprep.mubr.msk.bf16.mxu1 %vm3166_vm0, %v3165_v22  ;;  %2917 = vmatpush3.bf16.msra.mxu1 %v3163_v19 }
  0xc6   :  { %2918 = vmatprep.subr.bf16.mxu1 %v3165_v22 }
  0xc7   :  { %2899 = vmatpush3.bf16.msra.mxu0 %v3155_v26 }
  0xc8   :  { %2900 = vmatprep.subr.bf16.mxu0 %v3165_v22 }
  0xc9   :  { %2919 = vmatpush3.bf16.msra.mxu1 %v3164_v20 }
  0xcb   :  { %2901 = vmatpush3.bf16.msra.mxu0 %v3156_v27 }
  0xcc   :  { %2902 = vmatprep.subr.bf16.mxu0 %v3165_v22 }
  0xcf   :  { %2903 = vmatpush3.bf16.msra.mxu0 %v3157_v28 }
  0xd0   :  { %2904 = vmatprep.subr.bf16.mxu0 %v3165_v22 }
  0xd3   :  { %2905 = vmatpush3.bf16.msra.mxu0 %v3158_v29 }
  0xd4   :  { %2906 = vmatprep.subr.bf16.mxu0 %v3165_v22 }
  0xd7   :  { %2907 = vmatpush3.bf16.msra.mxu0 %v3159_v30 }
  0xd8   :  { %2908 = vmatprep.subr.bf16.mxu0 %v3165_v22 }
  0xdb   :  { %2909 = vmatpush3.bf16.msra.mxu0 %v3160_v31 }
  0xdc   :  { %2910 = vmatprep.subr.bf16.mxu0 %v3165_v22 }
  0xdf   :  { %2911 = vmatpush3.bf16.msra.mxu0 %v3161_v32 }
  0xe2   :  { %2913 = vmatmul.mubr.bf16.vlgmr.msra.gmra.mrb[24].mxu0 %v3162_v33 }
  0xf5   :  { %v2636_v34 = vpop.f32.mrb[0].mxu0 }
  0xf6   :  { %v2637_v36 = vpop.f32.mrb[1].mxu0 }
  0xf7   :  { %v2638_v37 = vadd.f32 %v2637_v36, %v2636_v34  ;;  %v2639_v38 = vpop.f32.mrb[2].mxu0  ;;  %v2658_v39 = vpop.f32.mrb[0].mxu1 }
  0xf8   :  { %v2640_v40 = vpop.f32.mrb[3].mxu0  ;;  %v2659_v43 = vpop.f32.mrb[1].mxu1 }
  0xf9   :  { %v1815_v41 = vadd.f32 %v2638_v37, %v2390_v35  ;;  %v2641_v42 = vadd.f32 %v2640_v40, %v2639_v38  ;;  %v2660_v44 = vadd.f32 %v2659_v43, %v2658_v39  ;;  %v2661_v45 = vpop.f32.mrb[2].mxu1 }
  0xfa   :  { %v2662_v47 = vpop.f32.mrb[3].mxu1 }
  0xfb   :  { %v1818_v46 = vadd.f32 %v2641_v42, %v2390_v35  ;;  %v1856_v48 = vadd.f32 %v2660_v44, %v1815_v41  ;;  %v2663_v49 = vadd.f32 %v2662_v47, %v2661_v45 }
  0xfd   :  { %v1859_v50 = vadd.f32 %v2663_v49, %v1818_v46 }
 0x115   :  { %v2680_v51 = vpop.f32.mrb[4].mxu0 }
 0x116   :  { %v2681_v52 = vpop.f32.mrb[5].mxu0 }
 0x117   :  { %v2682_v53 = vadd.f32 %v2681_v52, %v2680_v51  ;;  %v2683_v54 = vpop.f32.mrb[6].mxu0  ;;  %v2702_v57 = vpop.f32.mrb[4].mxu1 }
 0x118   :  { %v2684_v55 = vpop.f32.mrb[7].mxu0  ;;  %v2703_v59 = vpop.f32.mrb[5].mxu1 }
 0x119   :  { %v1897_v56 = vadd.f32 %v2682_v53, %v1856_v48  ;;  %v2685_v58 = vadd.f32 %v2684_v55, %v2683_v54  ;;  %v2704_v61 = vadd.f32 %v2703_v59, %v2702_v57  ;;  %v2705_v62 = vpop.f32.mrb[6].mxu1 }
 0x11a   :  { %v2706_v63 = vpop.f32.mrb[7].mxu1 }
 0x11b   :  { %v1900_v60 = vadd.f32 %v2685_v58, %v1859_v50  ;;  %v1938_v0 = vadd.f32 %v2704_v61, %v1897_v56  ;;  %v2707_v1 = vadd.f32 %v2706_v63, %v2705_v62 }
 0x11d   :  { %v1941_v2 = vadd.f32 %v2707_v1, %v1900_v60 }
 0x135   :  { %v2724_v3 = vpop.f32.mrb[8].mxu0 }
 0x136   :  { %v2725_v4 = vpop.f32.mrb[9].mxu0 }
 0x137   :  { %v2726_v5 = vadd.f32 %v2725_v4, %v2724_v3  ;;  %v2727_v6 = vpop.f32.mrb[10].mxu0  ;;  %v2746_v7 = vpop.f32.mrb[8].mxu1 }
 0x138   :  { %v2728_v8 = vpop.f32.mrb[11].mxu0  ;;  %v2747_v11 = vpop.f32.mrb[9].mxu1 }
 0x139   :  { %v1979_v9 = vadd.f32 %v2726_v5, %v1938_v0  ;;  %v2729_v10 = vadd.f32 %v2728_v8, %v2727_v6  ;;  %v2748_v12 = vadd.f32 %v2747_v11, %v2746_v7  ;;  %v2749_v13 = vpop.f32.mrb[10].mxu1 }
 0x13a   :  { %v2750_v15 = vpop.f32.mrb[11].mxu1 }
 0x13b   :  { %v1982_v14 = vadd.f32 %v2729_v10, %v1941_v2  ;;  %v2020_v16 = vadd.f32 %v2748_v12, %v1979_v9  ;;  %v2751_v17 = vadd.f32 %v2750_v15, %v2749_v13 }
 0x13d   :  { %v2023_v18 = vadd.f32 %v2751_v17, %v1982_v14  ;;  %v2616_v14 = vld [vmem:[%s3906_s4] ss:$0 sm:$0xff] }
 0x155   :  { %v2768_v21 = vpop.f32.mrb[12].mxu0 }
 0x156   :  { %v2769_v23 = vpop.f32.mrb[13].mxu0 }
 0x157   :  { %v2770_v24 = vadd.f32 %v2769_v23, %v2768_v21  ;;  %v2771_v25 = vpop.f32.mrb[14].mxu0  ;;  %v2790_v26 = vpop.f32.mrb[12].mxu1 }
 0x158   :  { %v2772_v27 = vpop.f32.mrb[15].mxu0  ;;  %v2791_v30 = vpop.f32.mrb[13].mxu1 }
 0x159   :  { %v2061_v28 = vadd.f32 %v2770_v24, %v2020_v16  ;;  %v2773_v29 = vadd.f32 %v2772_v27, %v2771_v25  ;;  %v2792_v31 = vadd.f32 %v2791_v30, %v2790_v26  ;;  %v2793_v32 = vpop.f32.mrb[14].mxu1 }
 0x15a   :  { %v2794_v34 = vpop.f32.mrb[15].mxu1 }
 0x15b   :  { %v2064_v33 = vadd.f32 %v2773_v29, %v2023_v18  ;;  %v2102_v35 = vadd.f32 %v2792_v31, %v2061_v28  ;;  %v2795_v22 = vadd.f32 %v2794_v34, %v2793_v32 }
 0x15d   :  { %v2105_v36 = vadd.f32 %v2795_v22, %v2064_v33 }
 0x175   :  { %v2812_v37 = vpop.f32.mrb[16].mxu0 }
 0x176   :  { %v2813_v38 = vpop.f32.mrb[17].mxu0 }
 0x177   :  { %v2814_v39 = vadd.f32 %v2813_v38, %v2812_v37  ;;  %v2815_v40 = vpop.f32.mrb[18].mxu0  ;;  %v2834_v43 = vpop.f32.mrb[16].mxu1 }
 0x178   :  { %v2816_v41 = vpop.f32.mrb[19].mxu0  ;;  %v2835_v45 = vpop.f32.mrb[17].mxu1 }
 0x179   :  { %v2143_v42 = vadd.f32 %v2814_v39, %v2102_v35  ;;  %v2817_v44 = vadd.f32 %v2816_v41, %v2815_v40  ;;  %v2836_v47 = vadd.f32 %v2835_v45, %v2834_v43  ;;  %v2837_v48 = vpop.f32.mrb[18].mxu1 }
 0x17a   :  { %v2838_v49 = vpop.f32.mrb[19].mxu1 }
 0x17b   :  { %v2146_v46 = vadd.f32 %v2817_v44, %v2105_v36  ;;  %v2184_v50 = vadd.f32 %v2836_v47, %v2143_v42  ;;  %v2839_v51 = vadd.f32 %v2838_v49, %v2837_v48 }
 0x17d   :  { %v2187_v52 = vadd.f32 %v2839_v51, %v2146_v46 }
 0x195   :  { %v2856_v53 = vpop.f32.mrb[20].mxu0 }
 0x196   :  { %v2857_v54 = vpop.f32.mrb[21].mxu0 }
 0x197   :  { %v2858_v55 = vadd.f32 %v2857_v54, %v2856_v53  ;;  %v2859_v56 = vpop.f32.mrb[22].mxu0  ;;  %v2878_v57 = vpop.f32.mrb[20].mxu1 }
 0x198   :  { %v2860_v58 = vpop.f32.mrb[23].mxu0  ;;  %v2879_v61 = vpop.f32.mrb[21].mxu1 }
 0x199   :  { %v2225_v59 = vadd.f32 %v2858_v55, %v2184_v50  ;;  %v2861_v60 = vadd.f32 %v2860_v58, %v2859_v56  ;;  %v2880_v62 = vadd.f32 %v2879_v61, %v2878_v57  ;;  %v2881_v63 = vpop.f32.mrb[22].mxu1 }
 0x19a   :  { %v2882_v1 = vpop.f32.mrb[23].mxu1 }
 0x19b   :  { %v2228_v0 = vadd.f32 %v2861_v60, %v2187_v52  ;;  %v2883_v2 = vadd.f32 %v2882_v1, %v2881_v63  ;;  %v2266_v3 = vadd.f32 %v2880_v62, %v2225_v59 }
 0x19d   :  { %v2269_v4 = vadd.f32 %v2883_v2, %v2228_v0 }
 0x1b5   :  { %v2306_v5 = vpop.f32.mrb[24].mxu0 }
 0x1b6   :  { %v2307_v6 = vadd.f32 %v2306_v5, %v2266_v3  ;;  %v2914_v7 = vpop.f32.mrb[25].mxu0 }
 0x1b7   :  { %v2309_v8 = vpop.f32.mrb[26].mxu0 }
 0x1b8   :  { %v2310_v9 = vadd.f32 %v2309_v8, %v2269_v4  ;;  %v2915_v10 = vpop.f32.mrb[27].mxu0  ;;  %v2313_v11 = vmax.f32 %v2307_v6, 0.0 }
 0x1ba   :  { %v2314_v12 = vmax.f32 %v2310_v9, 0.0 }
 0x1bc   :  { %v2315_v13 = vpack.c.bf16 %v2314_v12, %v2313_v11 }
 0x1be   :  { %2921 = vmatmul.mubr.msk.bf16.vlgmr.msra.gmra.mrb[24].mxu1 %vm2339_vm1, %v2315_v13 }
 0x291   :  { %v2377_v15 = vpop.f32.mrb[24].mxu1 }
 0x292   :  { %v2378_v16 = vadd.f32 %v2616_v14, %v2377_v15  ;;  %v2922_v17 = vpop.f32.mrb[25].mxu1 }
 0x293   :  { %v2380_v18 = vpop.f32.mrb[26].mxu1 }
 0x294   :  { %2384 = vst [vmem:[%s3907_s5] sm:$0xff] %v2378_v16  ;;  %v2381_v19 = vadd.f32 %v2616_v14, %v2380_v18  ;;  %v2923_v20 = vpop.f32.mrb[27].mxu1 }
 0x296   :  { %2385 = vst [vmem:[%s3907_s5 + $0x8] sm:$0xff] %v2381_v19 }

</bundles_post_ra>
